<compile_context>
chip_gen: v7x
topology: tpu7x:2x2x1
jax: 0.10.0
libtpu: 0.0.40
codegen_flags: <defaults>
</compile_context>

<pallas_src>
import jax
import jax.numpy as jnp
from jax.experimental import pallas as pl
from jax.experimental.pallas import tpu as pltpu

_LANE = 128
_MAX_TILE_R = 1024                 # 3 * 1024 * 128 * 4B = 1.5 MiB / block

_VMEM_LIMIT_CACHE = None


def _vmem_limit_bytes():
    """Per-chip scoped-VMEM limit: 48 MiB on 64-MiB-VMEM parts (v7x), 64 MiB on v5e/v6e."""
    global _VMEM_LIMIT_CACHE
    if _VMEM_LIMIT_CACHE is None:
        cap = 128 << 20
        try:
            info = pltpu.get_tpu_info()
            for name in ("vmem_capacity_bytes", "vmem_size_bytes", "vmem_bytes"):
                v = getattr(info, name, None)
                if v:
                    cap = int(v)
                    break
        except Exception:
            pass
        _VMEM_LIMIT_CACHE = (48 << 20) if cap <= (64 << 20) else (64 << 20)
    return _VMEM_LIMIT_CACHE


def _pick_tile_r(rows, min_tiles=1):
    """Largest multiple-of-8 divisor of `rows` that is <= _MAX_TILE_R and yields >= min_tiles tiles."""
    if rows % 8 != 0:
        return rows                # full-extent block: exempt from the (8,128) divisibility rule
    cap = min(rows, _MAX_TILE_R)
    if min_tiles > 1 and rows >= 8 * min_tiles:
        cap = min(cap, (rows // min_tiles) // 8 * 8)
    d = max(cap - cap % 8, 8)
    while d >= 8:
        if rows % d == 0:
            return d
        d -= 8
    return rows


def _recip(x):
    """EUP reciprocal + one Newton step (rel err ~2^-24, holds the 2e-5 test tolerance)."""
    r = pl.reciprocal(x, approx=True)
    return r * (2.0 - x * r)


def _gray(r, g, b):
    return 0.2989 * r + 0.587 * g + 0.114 * b


def _gray_mean(img):
    """Per-image grayscale mean. img: (B, 3, ...) float32 -> (B,)."""
    g = _gray(img[:, 0], img[:, 1], img[:, 2])
    return jnp.mean(g.reshape(img.shape[0], -1), axis=1)


# ---------------------------------------------------------------------------
# Kernel 1: brightness -> contrast(pre) -> saturation -> hue  (+ gray partial sums)
# ---------------------------------------------------------------------------
def _aug_kernel(flags_ref, scal_ref, x_ref, o_ref, psum_ref):
    # flags_ref (SMEM int32[5])    : apply_brightness, apply_contrast_pre, apply_saturation,
    #                                apply_hue, need_gray_partial_sums (== apply_contrast_post)
    # scal_ref  (SMEM float32[4+B]): bf, cf, sf, hf, then per-image grayscale mean (pre-contrast)
    # x_ref / o_ref                : (1, 3, TILE_R, 128) float32 lane-dense tiles
    # psum_ref                     : (1, 1, 1, 128) per-block grayscale row-sums
    b = pl.program_id(0)

    # 1) brightness fused into the initial copy (no copy-then-overwrite pass).
    #    No clip when brightness is disabled.
    @pl.when(flags_ref[0] != 0)
    def _():
        o_ref[...] = jnp.clip(scal_ref[0] * x_ref[...], 0.0, 1.0)

    @pl.when(flags_ref[0] == 0)
    def _():
        o_ref[...] = x_ref[...]

    # 2) contrast (contrast_mode == 1 branch). The per-image grayscale mean is precomputed
    #    outside the tile loop so HW tiling keeps torchvision's per-image semantics.
    @pl.when(flags_ref[1] != 0)
    def _():
        cf = scal_ref[1]
        m = scal_ref[4 + b]
        o_ref[...] = jnp.clip(cf * o_ref[...] + (1.0 - cf) * m, 0.0, 1.0)

    # 3) saturation: blend with grayscale
    @pl.when(flags_ref[2] != 0)
    def _():
        sf = scal_ref[2]
        img = o_ref[0]                 # (3, TILE_R, 128)
        r, g, bl = img[0], img[1], img[2]
        gray = _gray(r, g, bl)
        o_ref[0, 0] = jnp.clip(sf * r + (1.0 - sf) * gray, 0.0, 1.0)
        o_ref[0, 1] = jnp.clip(sf * g + (1.0 - sf) * gray, 0.0, 1.0)
        o_ref[0, 2] = jnp.clip(sf * bl + (1.0 - sf) * gray, 0.0, 1.0)

    # 4) hue: RGB -> HSV, shift h, HSV -> RGB (torchvision math, branchless back-conversion)
    @pl.when(flags_ref[3] != 0)
    def _():
        hf = scal_ref[3]
        img = o_ref[0]                 # (3, TILE_R, 128)
        r, g, bl = img[0], img[1], img[2]

        maxc = jnp.maximum(jnp.maximum(r, g), bl)
        minc = jnp.minimum(jnp.minimum(r, g), bl)
        eqc = maxc == minc
        cr = maxc - minc
        ones = jnp.ones_like(maxc)
        maxc_safe = jnp.where(eqc, ones, maxc)
        cr_safe = jnp.where(eqc, ones, cr)

        inv_max = _recip(maxc_safe)    # EUP reciprocal (otherwise-idle slot)
        inv_cr = _recip(cr_safe)
        s = cr * inv_max
        rc = (maxc - r) * inv_cr
        gc = (maxc - g) * inv_cr
        bc = (maxc - bl) * inv_cr

        is_r = maxc == r
        is_g = (maxc == g) & (maxc != r)
        is_b = (maxc != g) & (maxc != r)
        h = (jnp.where(is_r, bc - gc, 0.0)
             + jnp.where(is_g, 2.0 + rc - bc, 0.0)
             + jnp.where(is_b, 4.0 + gc - rc, 0.0))
        # fused modulo: mod(mod(h/6 + 1, 1) + hf, 1) == mod(h/6 + 1 + hf, 1)
        h6 = jnp.mod(h * (1.0 / 6.0) + 1.0 + hf, 1.0) * 6.0

        v = maxc
        vs = v * s

        # branchless HSV->RGB: c_n = v - v*s*clip(min(k, 4-k), 0, 1), k = (n + 6h) mod 6
        # (equals the torchvision p/q/t + sector-select formulation for v,s in [0,1])
        def chan(n):
            k = jnp.mod(n + h6, 6.0)
            a = jnp.clip(jnp.minimum(k, 4.0 - k), 0.0, 1.0)
            return v - vs * a

        o_ref[0, 0] = chan(5.0)
        o_ref[0, 1] = chan(3.0)
        o_ref[0, 2] = chan(1.0)

    # 5) per-block grayscale row-sums (lane-dense (1,128) store) for the post-hue
    #    contrast mean — avoids an extra full-image HBM read in XLA on that path.
    @pl.when(flags_ref[4] != 0)
    def _():
        img = o_ref[0]
        gray = _gray(img[0], img[1], img[2])          # (TILE_R, 128)
        psum_ref[...] = jnp.sum(gray, axis=0).reshape(psum_ref.shape)

    @pl.when(flags_ref[4] == 0)
    def _():
        psum_ref[...] = jnp.zeros_like(psum_ref)


# ---------------------------------------------------------------------------
# Kernel 2: contrast (contrast_mode == 0 branch, applied after saturation/hue).
# Only invoked when its flag is set (host-side branch, mirroring the module).
# ---------------------------------------------------------------------------
def _contrast_kernel(scal_ref, x_ref, o_ref):
    # scal_ref (SMEM float32[1+B]): contrast factor, then per-image grayscale mean
    b = pl.program_id(0)
    cf = scal_ref[0]
    m = scal_ref[1 + b]
    o_ref[...] = jnp.clip(cf * x_ref[...] + (1.0 - cf) * m, 0.0, 1.0)


# ---------------------------------------------------------------------------
# Wrapper
# ---------------------------------------------------------------------------
def photometric_distortion(image, flags, factors, tile_r=None):
    """image: (B, 3, H, W) float32 in [0,1].
    flags  : static python ints (apply_brightness, apply_contrast_pre, apply_saturation,
                                 apply_hue, apply_contrast_post) -- host-side, like np.random
    factors: python floats or traced jnp scalars (brightness_f, contrast_f, saturation_f, hue_f)
    """
    apply_b, apply_cpre, apply_s, apply_h, apply_cpost = (int(f) for f in flags)
    fac = jnp.stack([jnp.asarray(v, dtype=jnp.float32) for v in factors])  # traced-friendly

    B, C, H, W = image.shape
    assert C == 3, "photometric distortion expects RGB images"
    imgf = image.astype(jnp.float32)

    # lane-dense layout: (B, 3, R, 128), HW padded up to a multiple of 128 if needed.
    # (For ADE20K 512x512 crops HW is 128-aligned, so the pad/slice passes are skipped.)
    HW = H * W
    pad = (-HW) % _LANE
    x = imgf.reshape(B, C, HW)
    if pad:
        x = jnp.pad(x, ((0, 0), (0, 0), (0, pad)))
    HWp = HW + pad
    R = HWp // _LANE
    x = x.reshape(B, C, R, _LANE)

    if tile_r is None:
        # ensure >= 2 grid blocks when B == 1 so both v7x TensorCores get work
        tile_r = _pick_tile_r(R, min_tiles=2 if B == 1 else 1)
    assert R % tile_r == 0 and (tile_r % 8 == 0 or tile_r == R)
    T = R // tile_r

    # Per-image grayscale mean at the point the pre-contrast stage runs (i.e. after brightness).
    # Precomputed here (cheap XLA reduction) so each tile uses the correct per-image mean.
    if apply_cpre:
        xb = jnp.clip(fac[0] * imgf, 0.0, 1.0) if apply_b else imgf
        mean_pre = _gray_mean(xb)
    else:
        mean_pre = jnp.zeros((B,), jnp.float32)

    flags_arr = jnp.array([apply_b, apply_cpre, apply_s, apply_h, apply_cpost], dtype=jnp.int32)
    scal_arr = jnp.concatenate([fac, mean_pre.astype(jnp.float32)])

    block = (1, C, tile_r, _LANE)
    idx = lambda b, t: (b, 0, t, 0)
    psum_block = (1, 1, 1, _LANE)
    psum_idx = lambda b, t: (b, t, 0, 0)
    cparams = pltpu.CompilerParams(
        dimension_semantics=("parallel", "parallel"),   # shard batch & row-tiles across TCs (v7x)
        vmem_limit_bytes=_vmem_limit_bytes())

    y, psums = pl.pallas_call(
        _aug_kernel,
        out_shape=(jax.ShapeDtypeStruct((B, C, R, _LANE), jnp.float32),
                   jax.ShapeDtypeStruct((B, T, 1, _LANE), jnp.float32)),
        grid=(B, T),
        in_specs=[
            pl.BlockSpec(memory_space=pltpu.MemorySpace.SMEM),   # flags
            pl.BlockSpec(memory_space=pltpu.MemorySpace.SMEM),   # factors + per-image means
            pl.BlockSpec(block, idx),
        ],
        out_specs=[pl.BlockSpec(block, idx),
                   pl.BlockSpec(psum_block, psum_idx)],
        compiler_params=cparams,
    )(flags_arr, scal_arr, x)

    if apply_cpost:
        # per-image gray mean of the adjusted image from the in-kernel partial sums
        # (no extra full-image HBM read); subtract the padded-tail contribution if any.
        total = jnp.sum(psums.reshape(B, -1), axis=1)
        if pad:
            tail = y.reshape(B, C, HWp)[:, :, HW:]
            total = total - jnp.sum(_gray(tail[:, 0], tail[:, 1], tail[:, 2]), axis=1)
        mean_post = total / jnp.float32(HW)
        scal2 = jnp.concatenate([fac[1:2], mean_post.astype(jnp.float32)])
        y = pl.pallas_call(
            _contrast_kernel,
            out_shape=jax.ShapeDtypeStruct((B, C, R, _LANE), jnp.float32),
            grid=(B, T),
            in_specs=[
                pl.BlockSpec(memory_space=pltpu.MemorySpace.SMEM),
                pl.BlockSpec(block, idx),
            ],
            out_specs=pl.BlockSpec(block, idx),
            compiler_params=cparams,
            input_output_aliases={1: 0},       # run in place over the intermediate image
        )(scal2, y)

    if pad:
        out = y.reshape(B, C, HWp)[:, :, :HW].reshape(B, C, H, W)
    else:
        out = y.reshape(B, C, H, W)
    return out.astype(image.dtype)


# ---------------------------------------------------------------------------
# Host-side random gating / factors (mirrors the np.random logic of forward())
# ---------------------------------------------------------------------------
def sample_params(key, brightness, contrast, saturation, hue):
    ks = jax.random.split(key, 9)
    apply_b = int(jax.random.randint(ks[0], (), 0, 2))
    bf = float(jax.random.uniform(ks[1], (), minval=1 - brightness, maxval=1 + brightness))
    contrast_mode = int(jax.random.randint(ks[2], (), 0, 2))
    apply_c = int(jax.random.randint(ks[3], (), 0, 2))
    cf = float(jax.random.uniform(ks[4], (), minval=1 - contrast, maxval=1 + contrast))
    apply_s = int(jax.random.randint(ks[5], (), 0, 2))
    sf = float(jax.random.uniform(ks[6], (), minval=1 - saturation, maxval=1 + saturation))
    apply_h = int(jax.random.randint(ks[7], (), 0, 2))
    hf = float(jax.random.uniform(ks[8], (), minval=-hue, maxval=hue))
    flags = (apply_b,
             int(contrast_mode == 1 and apply_c == 1),
             apply_s,
             apply_h,
             int(contrast_mode == 0 and apply_c == 1))
    factors = (bf, cf, sf, hf)
    return flags, factors


# ---------------------------------------------------------------------------
# Pure-JAX reference (same torchvision math, no Pallas) for the sanity check
# ---------------------------------------------------------------------------
def reference(image, flags, factors):
    apply_b, apply_cpre, apply_s, apply_h, apply_cpost = (int(f) for f in flags)
    bf, cf, sf, hf = (float(v) for v in factors)
    img = image.astype(jnp.float32)

    def blend(a, b_, f):
        return jnp.clip(f * a + (1.0 - f) * b_, 0.0, 1.0)

    def gray(im):
        return 0.2989 * im[:, 0:1] + 0.587 * im[:, 1:2] + 0.114 * im[:, 2:3]

    def contrast(im, f):
        mean = jnp.mean(gray(im), axis=(1, 2, 3), keepdims=True)
        return blend(im, mean, f)

    def hue(im, hfac):
        r, g, b = im[:, 0:1], im[:, 1:2], im[:, 2:3]
        maxc = jnp.maximum(jnp.maximum(r, g), b)
        minc = jnp.minimum(jnp.minimum(r, g), b)
        eqc = maxc == minc
        cr = maxc - minc
        ones = jnp.ones_like(maxc)
        s = cr / jnp.where(eqc, ones, maxc)
        crd = jnp.where(eqc, ones, cr)
        rc, gc, bc = (maxc - r) / crd, (maxc - g) / crd, (maxc - b) / crd
        h = ((maxc == r) * (bc - gc)
             + ((maxc == g) & (maxc != r)) * (2.0 + rc - bc)
             + ((maxc != g) & (maxc != r)) * (4.0 + gc - rc))
        h = jnp.mod(jnp.mod(h / 6.0 + 1.0, 1.0) + hfac, 1.0)
        v = maxc
        i = jnp.floor(h * 6.0)
        f = h * 6.0 - i
        i = i.astype(jnp.int32) % 6
        pp = jnp.clip(v * (1 - s), 0, 1)
        q = jnp.clip(v * (1 - s * f), 0, 1)
        t = jnp.clip(v * (1 - s * (1 - f)), 0, 1)

        def sel(o):
            out = o[5]
            for k in range(4, -1, -1):
                out = jnp.where(i == k, o[k], out)
            return out

        return jnp.concatenate(
            [sel([v, q, pp, pp, t, v]), sel([t, v, v, q, pp, pp]),
             sel([pp, pp, t, v, v, q])], axis=1)

    if apply_b:
        img = jnp.clip(bf * img, 0.0, 1.0)
    if apply_cpre:
        img = contrast(img, cf)
    if apply_s:
        img = blend(img, gray(img), sf)
    if apply_h:
        img = hue(img, hf)
    if apply_cpost:
        img = contrast(img, cf)
    return img


if __name__ == "__main__":
    root = jax.random.PRNGKey(0)
    k_img, k_par, k_img2, k_img3 = jax.random.split(root, 4)

    # Small image: HW = 256 -> a single (2, 128) row block per image (full-extent block path).
    B, C, H, W = 2, 3, 16, 16
    image = jax.random.uniform(k_img, (B, C, H, W), dtype=jnp.float32)   # RGB in [0, 1]
    flags, factors = sample_params(k_par, brightness=0.25, contrast=0.25,
                                   saturation=0.25, hue=0.1)

    configs = [
        (flags, factors),                               # randomly sampled gating (module behavior)
        ((1, 1, 1, 1, 0), (1.15, 0.85, 1.2, 0.07)),     # brightness + pre-contrast + sat + hue
        ((1, 0, 1, 1, 1), (0.9, 1.2, 0.8, -0.05)),      # post-contrast path (second kernel)
        ((0, 0, 0, 0, 0), (1.0, 1.0, 1.0, 0.0)),        # identity (all stages skipped)
    ]
    ok = True
    for fl, fa in configs:
        out = jax.block_until_ready(photometric_distortion(image, fl, fa))
        ref = reference(image, fl, fa)
        ok = ok and out.shape == image.shape and out.dtype == image.dtype
        ok = ok and bool(jnp.all(jnp.isfinite(out)))
        ok = ok and bool(jnp.allclose(out, ref, atol=2e-5))

    # Larger single image: forced small row tile exercises the (B, T) tiled grid and the
    # per-block partial sums for the post-contrast mean being combined across tiles.
    image2 = jax.random.uniform(k_img2, (1, 3, 64, 64), dtype=jnp.float32)
    fl2, fa2 = (1, 1, 1, 1, 1), (1.1, 0.8, 1.25, 0.05)
    ref2 = reference(image2, fl2, fa2)
    out2 = jax.block_until_ready(photometric_distortion(image2, fl2, fa2, tile_r=8))
    ok = ok and bool(jnp.allclose(out2, ref2, atol=2e-5))
    # Auto-tiled path: B == 1 forces >= 2 row tiles (v7x megacore occupancy).
    out2b = jax.block_until_ready(photometric_distortion(image2, fl2, fa2))
    ok = ok and bool(jnp.allclose(out2b, ref2, atol=2e-5))

    # Ragged HW (not 128-aligned): exercises the pad path and the padded-tail correction
    # of the in-kernel partial sums on the post-contrast branch.
    image3 = jax.random.uniform(k_img3, (1, 3, 10, 10), dtype=jnp.float32)
    fl3, fa3 = (1, 0, 1, 1, 1), (0.95, 1.15, 0.85, -0.08)
    out3 = jax.block_until_ready(photometric_distortion(image3, fl3, fa3))
    ok = ok and bool(jnp.allclose(out3, reference(image3, fl3, fa3), atol=2e-5))

    assert ok, "Pallas kernel output mismatch vs. pure-JAX reference"
    print("KERNEL_OK")
</pallas_src>

<mosaic_0001>
module attributes {stable_mosaic.version = 11 : i64} {
  func.func @_aug_kernel(%arg0: i32, %arg1: i32, %arg2: memref<5xi32, #tpu.memory_space<smem>>, %arg3: memref<6xf32, #tpu.memory_space<smem>>, %arg4: memref<1x3x2x128xf32, #tpu.memory_space<vmem>>, %arg5: memref<1x3x2x128xf32, #tpu.memory_space<vmem>>, %arg6: memref<1x1x1x128xf32, #tpu.memory_space<vmem>>) attributes {dimension_semantics = [#tpu.dimension_semantics<parallel>, #tpu.dimension_semantics<parallel>], iteration_bounds = array<i64: 2, 1>, scalar_prefetch = 0 : i64, scratch_operands = 0 : i64, tpu.core_type = #tpu.core_type<tc>, window_params = [{transform_indices = @transform_0, window_bounds = array<i64: 5>}, {transform_indices = @transform_1, window_bounds = array<i64: 6>}, {transform_indices = @transform_2, window_bounds = array<i64: 1, 3, 2, 128>}, {transform_indices = @transform_3, window_bounds = array<i64: 1, 3, 2, 128>}, {transform_indices = @transform_4, window_bounds = array<i64: 1, 1, 1, 128>}]} {
    %c0 = arith.constant 0 : index
    %0 = memref.load %arg2[%c0] : memref<5xi32, #tpu.memory_space<smem>>
    %c0_i32 = arith.constant 0 : i32
    %1 = arith.cmpi ne, %0, %c0_i32 : i32
    %2 = arith.extui %1 : i1 to i32
    %c0_i32_0 = arith.constant 0 : i32
    %3 = arith.cmpi ne, %2, %c0_i32_0 : i32
    scf.if %3 {
      %c0_15 = arith.constant 0 : index
      %28 = memref.load %arg3[%c0_15] : memref<6xf32, #tpu.memory_space<smem>>
      %c0_16 = arith.constant 0 : index
      %c0_17 = arith.constant 0 : index
      %c0_18 = arith.constant 0 : index
      %c0_19 = arith.constant 0 : index
      %29 = vector.load %arg4[%c0_16, %c0_17, %c0_18, %c0_19] : memref<1x3x2x128xf32, #tpu.memory_space<vmem>>, vector<1x3x2x128xf32>
      %30 = vector.broadcast %28 : f32 to vector<1x3x2x128xf32>
      %31 = arith.mulf %30, %29 : vector<1x3x2x128xf32>
      %cst = arith.constant 0.000000e+00 : f32
      %cst_20 = arith.constant 1.000000e+00 : f32
      %32 = vector.broadcast %cst : f32 to vector<1x3x2x128xf32>
      %33 = arith.maximumf %32, %31 : vector<1x3x2x128xf32>
      %34 = vector.broadcast %cst_20 : f32 to vector<1x3x2x128xf32>
      %35 = arith.minimumf %34, %33 : vector<1x3x2x128xf32>
      %c0_21 = arith.constant 0 : index
      %c0_22 = arith.constant 0 : index
      %c0_23 = arith.constant 0 : index
      %c0_24 = arith.constant 0 : index
      %36 = vector.load %arg5[%c0_21, %c0_22, %c0_23, %c0_24] : memref<1x3x2x128xf32, #tpu.memory_space<vmem>>, vector<1x3x2x128xf32>
      tpu.vector_store %arg5[%c0_21, %c0_22, %c0_23, %c0_24], %35 {strides = array<i32>} : memref<1x3x2x128xf32, #tpu.memory_space<vmem>>, vector<1x3x2x128xf32>,
    } else {
    }
    %c0_1 = arith.constant 0 : index
    %4 = memref.load %arg2[%c0_1] : memref<5xi32, #tpu.memory_space<smem>>
    %c0_i32_2 = arith.constant 0 : i32
    %5 = arith.cmpi eq, %4, %c0_i32_2 : i32
    %6 = arith.extui %5 : i1 to i32
    %c0_i32_3 = arith.constant 0 : i32
    %7 = arith.cmpi ne, %6, %c0_i32_3 : i32
    scf.if %7 {
      %c0_15 = arith.constant 0 : index
      %c0_16 = arith.constant 0 : index
      %c0_17 = arith.constant 0 : index
      %c0_18 = arith.constant 0 : index
      %28 = vector.load %arg4[%c0_15, %c0_16, %c0_17, %c0_18] : memref<1x3x2x128xf32, #tpu.memory_space<vmem>>, vector<1x3x2x128xf32>
      %c0_19 = arith.constant 0 : index
      %c0_20 = arith.constant 0 : index
      %c0_21 = arith.constant 0 : index
      %c0_22 = arith.constant 0 : index
      %29 = vector.load %arg5[%c0_19, %c0_20, %c0_21, %c0_22] : memref<1x3x2x128xf32, #tpu.memory_space<vmem>>, vector<1x3x2x128xf32>
      tpu.vector_store %arg5[%c0_19, %c0_20, %c0_21, %c0_22], %28 {strides = array<i32>} : memref<1x3x2x128xf32, #tpu.memory_space<vmem>>, vector<1x3x2x128xf32>,
    } else {
    }
    %c1 = arith.constant 1 : index
    %8 = memref.load %arg2[%c1] : memref<5xi32, #tpu.memory_space<smem>>
    %c0_i32_4 = arith.constant 0 : i32
    %9 = arith.cmpi ne, %8, %c0_i32_4 : i32
    %10 = arith.extui %9 : i1 to i32
    %c0_i32_5 = arith.constant 0 : i32
    %11 = arith.cmpi ne, %10, %c0_i32_5 : i32
    scf.if %11 {
      %c1_15 = arith.constant 1 : index
      %28 = memref.load %arg3[%c1_15] : memref<6xf32, #tpu.memory_space<smem>>
      %c4_i32 = arith.constant 4 : i32
      %29 = arith.addi %c4_i32, %arg0 : i32
      %30 = arith.index_cast %29 : i32 to index
      %31 = memref.load %arg3[%30] : memref<6xf32, #tpu.memory_space<smem>>
      %c0_16 = arith.constant 0 : index
      %c0_17 = arith.constant 0 : index
      %c0_18 = arith.constant 0 : index
      %c0_19 = arith.constant 0 : index
      %32 = vector.load %arg5[%c0_16, %c0_17, %c0_18, %c0_19] : memref<1x3x2x128xf32, #tpu.memory_space<vmem>>, vector<1x3x2x128xf32>
      %33 = vector.broadcast %28 : f32 to vector<1x3x2x128xf32>
      %34 = arith.mulf %33, %32 : vector<1x3x2x128xf32>
      %cst = arith.constant 1.000000e+00 : f32
      %35 = arith.subf %cst, %28 : f32
      %36 = arith.mulf %35, %31 : f32
      %37 = vector.broadcast %36 : f32 to vector<1x3x2x128xf32>
      %38 = arith.addf %34, %37 : vector<1x3x2x128xf32>
      %cst_20 = arith.constant 0.000000e+00 : f32
      %cst_21 = arith.constant 1.000000e+00 : f32
      %39 = vector.broadcast %cst_20 : f32 to vector<1x3x2x128xf32>
      %40 = arith.maximumf %39, %38 : vector<1x3x2x128xf32>
      %41 = vector.broadcast %cst_21 : f32 to vector<1x3x2x128xf32>
      %42 = arith.minimumf %41, %40 : vector<1x3x2x128xf32>
      %c0_22 = arith.constant 0 : index
      %c0_23 = arith.constant 0 : index
      %c0_24 = arith.constant 0 : index
      %c0_25 = arith.constant 0 : index
      %43 = vector.load %arg5[%c0_22, %c0_23, %c0_24, %c0_25] : memref<1x3x2x128xf32, #tpu.memory_space<vmem>>, vector<1x3x2x128xf32>
      tpu.vector_store %arg5[%c0_22, %c0_23, %c0_24, %c0_25], %42 {strides = array<i32>} : memref<1x3x2x128xf32, #tpu.memory_space<vmem>>, vector<1x3x2x128xf32>,
    } else {
    }
    %c2 = arith.constant 2 : index
    %12 = memref.load %arg2[%c2] : memref<5xi32, #tpu.memory_space<smem>>
    %c0_i32_6 = arith.constant 0 : i32
    %13 = arith.cmpi ne, %12, %c0_i32_6 : i32
    %14 = arith.extui %13 : i1 to i32
    %c0_i32_7 = arith.constant 0 : i32
    %15 = arith.cmpi ne, %14, %c0_i32_7 : i32
    scf.if %15 {
      %c2_15 = arith.constant 2 : index
      %28 = memref.load %arg3[%c2_15] : memref<6xf32, #tpu.memory_space<smem>>
      %c0_16 = arith.constant 0 : index
      %c0_17 = arith.constant 0 : index
      %c0_18 = arith.constant 0 : index
      %c0_19 = arith.constant 0 : index
      %29 = vector.load %arg5[%c0_16, %c0_17, %c0_18, %c0_19] : memref<1x3x2x128xf32, #tpu.memory_space<vmem>>, vector<1x3x2x128xf32>
      %30 = vector.shape_cast %29 : vector<1x3x2x128xf32> to vector<3x2x128xf32>
      %31 = vector.extract_strided_slice %30 {offsets = [0, 0, 0], sizes = [1, 2, 128], strides = [1, 1, 1]} : vector<3x2x128xf32> to vector<1x2x128xf32>
      %32 = vector.shape_cast %31 : vector<1x2x128xf32> to vector<2x128xf32>
      %33 = vector.extract_strided_slice %30 {offsets = [1, 0, 0], sizes = [1, 2, 128], strides = [1, 1, 1]} : vector<3x2x128xf32> to vector<1x2x128xf32>
      %34 = vector.shape_cast %33 : vector<1x2x128xf32> to vector<2x128xf32>
      %35 = vector.extract_strided_slice %30 {offsets = [2, 0, 0], sizes = [1, 2, 128], strides = [1, 1, 1]} : vector<3x2x128xf32> to vector<1x2x128xf32>
      %36 = vector.shape_cast %35 : vector<1x2x128xf32> to vector<2x128xf32>
      %cst = arith.constant 2.989000e-01 : f32
      %37 = vector.broadcast %cst : f32 to vector<2x128xf32>
      %38 = arith.mulf %37, %32 : vector<2x128xf32>
      %cst_20 = arith.constant 5.870000e-01 : f32
      %39 = vector.broadcast %cst_20 : f32 to vector<2x128xf32>
      %40 = arith.mulf %39, %34 : vector<2x128xf32>
      %41 = arith.addf %38, %40 : vector<2x128xf32>
      %cst_21 = arith.constant 1.140000e-01 : f32
      %42 = vector.broadcast %cst_21 : f32 to vector<2x128xf32>
      %43 = arith.mulf %42, %36 : vector<2x128xf32>
      %44 = arith.addf %41, %43 : vector<2x128xf32>
      %45 = vector.broadcast %28 : f32 to vector<2x128xf32>
      %46 = arith.mulf %45, %32 : vector<2x128xf32>
      %cst_22 = arith.constant 1.000000e+00 : f32
      %47 = arith.subf %cst_22, %28 : f32
      %48 = vector.broadcast %47 : f32 to vector<2x128xf32>
      %49 = arith.mulf %48, %44 : vector<2x128xf32>
      %50 = arith.addf %46, %49 : vector<2x128xf32>
      %cst_23 = arith.constant 0.000000e+00 : f32
      %cst_24 = arith.constant 1.000000e+00 : f32
      %51 = vector.broadcast %cst_23 : f32 to vector<2x128xf32>
      %52 = arith.maximumf %51, %50 : vector<2x128xf32>
      %53 = vector.broadcast %cst_24 : f32 to vector<2x128xf32>
      %54 = arith.minimumf %53, %52 : vector<2x128xf32>
      %c0_25 = arith.constant 0 : index
      %c0_26 = arith.constant 0 : index
      %c0_27 = arith.constant 0 : index
      %c0_28 = arith.constant 0 : index
      %55 = vector.load %arg5[%c0_25, %c0_26, %c0_27, %c0_28] : memref<1x3x2x128xf32, #tpu.memory_space<vmem>>, vector<1x1x2x128xf32>
      %56 = vector.shape_cast %55 : vector<1x1x2x128xf32> to vector<2x128xf32>
      %57 = vector.shape_cast %54 : vector<2x128xf32> to vector<1x1x2x128xf32>
      tpu.vector_store %arg5[%c0_25, %c0_26, %c0_27, %c0_28], %57 {strides = array<i32>} : memref<1x3x2x128xf32, #tpu.memory_space<vmem>>, vector<1x1x2x128xf32>,
      %58 = vector.broadcast %28 : f32 to vector<2x128xf32>
      %59 = arith.mulf %58, %34 : vector<2x128xf32>
      %cst_29 = arith.constant 1.000000e+00 : f32
      %60 = arith.subf %cst_29, %28 : f32
      %61 = vector.broadcast %60 : f32 to vector<2x128xf32>
      %62 = arith.mulf %61, %44 : vector<2x128xf32>
      %63 = arith.addf %59, %62 : vector<2x128xf32>
      %cst_30 = arith.constant 0.000000e+00 : f32
      %cst_31 = arith.constant 1.000000e+00 : f32
      %64 = vector.broadcast %cst_30 : f32 to vector<2x128xf32>
      %65 = arith.maximumf %64, %63 : vector<2x128xf32>
      %66 = vector.broadcast %cst_31 : f32 to vector<2x128xf32>
      %67 = arith.minimumf %66, %65 : vector<2x128xf32>
      %c0_32 = arith.constant 0 : index
      %c1_33 = arith.constant 1 : index
      %c0_34 = arith.constant 0 : index
      %c0_35 = arith.constant 0 : index
      %68 = vector.load %arg5[%c0_32, %c1_33, %c0_34, %c0_35] : memref<1x3x2x128xf32, #tpu.memory_space<vmem>>, vector<1x1x2x128xf32>
      %69 = vector.shape_cast %68 : vector<1x1x2x128xf32> to vector<2x128xf32>
      %70 = vector.shape_cast %67 : vector<2x128xf32> to vector<1x1x2x128xf32>
      tpu.vector_store %arg5[%c0_32, %c1_33, %c0_34, %c0_35], %70 {strides = array<i32>} : memref<1x3x2x128xf32, #tpu.memory_space<vmem>>, vector<1x1x2x128xf32>,
      %71 = vector.broadcast %28 : f32 to vector<2x128xf32>
      %72 = arith.mulf %71, %36 : vector<2x128xf32>
      %cst_36 = arith.constant 1.000000e+00 : f32
      %73 = arith.subf %cst_36, %28 : f32
      %74 = vector.broadcast %73 : f32 to vector<2x128xf32>
      %75 = arith.mulf %74, %44 : vector<2x128xf32>
      %76 = arith.addf %72, %75 : vector<2x128xf32>
      %cst_37 = arith.constant 0.000000e+00 : f32
      %cst_38 = arith.constant 1.000000e+00 : f32
      %77 = vector.broadcast %cst_37 : f32 to vector<2x128xf32>
      %78 = arith.maximumf %77, %76 : vector<2x128xf32>
      %79 = vector.broadcast %cst_38 : f32 to vector<2x128xf32>
      %80 = arith.minimumf %79, %78 : vector<2x128xf32>
      %c0_39 = arith.constant 0 : index
      %c2_40 = arith.constant 2 : index
      %c0_41 = arith.constant 0 : index
      %c0_42 = arith.constant 0 : index
      %81 = vector.load %arg5[%c0_39, %c2_40, %c0_41, %c0_42] : memref<1x3x2x128xf32, #tpu.memory_space<vmem>>, vector<1x1x2x128xf32>
      %82 = vector.shape_cast %81 : vector<1x1x2x128xf32> to vector<2x128xf32>
      %83 = vector.shape_cast %80 : vector<2x128xf32> to vector<1x1x2x128xf32>
      tpu.vector_store %arg5[%c0_39, %c2_40, %c0_41, %c0_42], %83 {strides = array<i32>} : memref<1x3x2x128xf32, #tpu.memory_space<vmem>>, vector<1x1x2x128xf32>,
    } else {
    }
    %c3 = arith.constant 3 : index
    %16 = memref.load %arg2[%c3] : memref<5xi32, #tpu.memory_space<smem>>
    %c0_i32_8 = arith.constant 0 : i32
    %17 = arith.cmpi ne, %16, %c0_i32_8 : i32
    %18 = arith.extui %17 : i1 to i32
    %c0_i32_9 = arith.constant 0 : i32
    %19 = arith.cmpi ne, %18, %c0_i32_9 : i32
    scf.if %19 {
      %c3_15 = arith.constant 3 : index
      %28 = memref.load %arg3[%c3_15] : memref<6xf32, #tpu.memory_space<smem>>
      %c0_16 = arith.constant 0 : index
      %c0_17 = arith.constant 0 : index
      %c0_18 = arith.constant 0 : index
      %c0_19 = arith.constant 0 : index
      %29 = vector.load %arg5[%c0_16, %c0_17, %c0_18, %c0_19] : memref<1x3x2x128xf32, #tpu.memory_space<vmem>>, vector<1x3x2x128xf32>
      %30 = vector.shape_cast %29 : vector<1x3x2x128xf32> to vector<3x2x128xf32>
      %31 = vector.extract_strided_slice %30 {offsets = [0, 0, 0], sizes = [1, 2, 128], strides = [1, 1, 1]} : vector<3x2x128xf32> to vector<1x2x128xf32>
      %32 = vector.shape_cast %31 : vector<1x2x128xf32> to vector<2x128xf32>
      %33 = vector.extract_strided_slice %30 {offsets = [1, 0, 0], sizes = [1, 2, 128], strides = [1, 1, 1]} : vector<3x2x128xf32> to vector<1x2x128xf32>
      %34 = vector.shape_cast %33 : vector<1x2x128xf32> to vector<2x128xf32>
      %35 = vector.extract_strided_slice %30 {offsets = [2, 0, 0], sizes = [1, 2, 128], strides = [1, 1, 1]} : vector<3x2x128xf32> to vector<1x2x128xf32>
      %36 = vector.shape_cast %35 : vector<1x2x128xf32> to vector<2x128xf32>
      %37 = arith.maximumf %32, %34 : vector<2x128xf32>
      %38 = arith.maximumf %37, %36 : vector<2x128xf32>
      %39 = arith.minimumf %32, %34 : vector<2x128xf32>
      %40 = arith.minimumf %39, %36 : vector<2x128xf32>
      %41 = arith.cmpf oeq, %38, %40 : vector<2x128xf32>
      %42 = arith.subf %38, %40 : vector<2x128xf32>
      %cst = arith.constant 1.000000e+00 : f32
      %43 = vector.broadcast %cst : f32 to vector<2x128xf32>
      %44 = arith.select %41, %43, %38 : vector<2x128xi1>, vector<2x128xf32>
      %45 = arith.select %41, %43, %42 : vector<2x128xi1>, vector<2x128xf32>
      %46 = tpu.reciprocal %44 {approx = true} : vector<2x128xf32> -> vector<2x128xf32>
      %47 = arith.mulf %44, %46 : vector<2x128xf32>
      %cst_20 = arith.constant 2.000000e+00 : f32
      %48 = vector.broadcast %cst_20 : f32 to vector<2x128xf32>
      %49 = arith.subf %48, %47 : vector<2x128xf32>
      %50 = arith.mulf %46, %49 : vector<2x128xf32>
      %51 = tpu.reciprocal %45 {approx = true} : vector<2x128xf32> -> vector<2x128xf32>
      %52 = arith.mulf %45, %51 : vector<2x128xf32>
      %cst_21 = arith.constant 2.000000e+00 : f32
      %53 = vector.broadcast %cst_21 : f32 to vector<2x128xf32>
      %54 = arith.subf %53, %52 : vector<2x128xf32>
      %55 = arith.mulf %51, %54 : vector<2x128xf32>
      %56 = arith.mulf %42, %50 : vector<2x128xf32>
      %57 = arith.subf %38, %32 : vector<2x128xf32>
      %58 = arith.mulf %57, %55 : vector<2x128xf32>
      %59 = arith.subf %38, %34 : vector<2x128xf32>
      %60 = arith.mulf %59, %55 : vector<2x128xf32>
      %61 = arith.subf %38, %36 : vector<2x128xf32>
      %62 = arith.mulf %61, %55 : vector<2x128xf32>
      %63 = arith.cmpf oeq, %38, %32 : vector<2x128xf32>
      %64 = arith.cmpf oeq, %38, %34 : vector<2x128xf32>
      %65 = arith.cmpf one, %38, %32 : vector<2x128xf32>
      %66 = arith.andi %64, %65 : vector<2x128xi1>
      %67 = arith.cmpf one, %38, %34 : vector<2x128xf32>
      %68 = arith.cmpf one, %38, %32 : vector<2x128xf32>
      %69 = arith.andi %67, %68 : vector<2x128xi1>
      %70 = arith.subf %62, %60 : vector<2x128xf32>
      %cst_22 = arith.constant 0.000000e+00 : f32
      %71 = vector.broadcast %cst_22 : f32 to vector<2x128xf32>
      %72 = arith.select %63, %70, %71 : vector<2x128xi1>, vector<2x128xf32>
      %cst_23 = arith.constant 2.000000e+00 : f32
      %73 = vector.broadcast %cst_23 : f32 to vector<2x128xf32>
      %74 = arith.addf %73, %58 : vector<2x128xf32>
      %75 = arith.subf %74, %62 : vector<2x128xf32>
      %cst_24 = arith.constant 0.000000e+00 : f32
      %76 = vector.broadcast %cst_24 : f32 to vector<2x128xf32>
      %77 = arith.select %66, %75, %76 : vector<2x128xi1>, vector<2x128xf32>
      %78 = arith.addf %72, %77 : vector<2x128xf32>
      %cst_25 = arith.constant 4.000000e+00 : f32
      %79 = vector.broadcast %cst_25 : f32 to vector<2x128xf32>
      %80 = arith.addf %79, %60 : vector<2x128xf32>
      %81 = arith.subf %80, %58 : vector<2x128xf32>
      %cst_26 = arith.constant 0.000000e+00 : f32
      %82 = vector.broadcast %cst_26 : f32 to vector<2x128xf32>
      %83 = arith.select %69, %81, %82 : vector<2x128xi1>, vector<2x128xf32>
      %84 = arith.addf %78, %83 : vector<2x128xf32>
      %cst_27 = arith.constant 0.166666672 : f32
      %85 = vector.broadcast %cst_27 : f32 to vector<2x128xf32>
      %86 = arith.mulf %84, %85 : vector<2x128xf32>
      %cst_28 = arith.constant 1.000000e+00 : f32
      %87 = vector.broadcast %cst_28 : f32 to vector<2x128xf32>
      %88 = arith.addf %86, %87 : vector<2x128xf32>
      %89 = vector.broadcast %28 : f32 to vector<2x128xf32>
      %90 = arith.addf %88, %89 : vector<2x128xf32>
      %cst_29 = arith.constant 1.000000e+00 : f32
      %91 = vector.broadcast %cst_29 : f32 to vector<2x128xf32>
      %92 = arith.remf %90, %91 : vector<2x128xf32>
      %cst_30 = arith.constant 0.000000e+00 : f32
      %93 = vector.broadcast %cst_30 : f32 to vector<2x128xf32>
      %94 = arith.cmpf one, %92, %93 : vector<2x128xf32>
      %cst_31 = arith.constant 0.000000e+00 : f32
      %95 = vector.broadcast %cst_31 : f32 to vector<2x128xf32>
      %96 = arith.cmpf olt, %92, %95 : vector<2x128xf32>
      %cst_32 = arith.constant 0.000000e+00 : f32
      %97 = arith.cmpf olt, %cst_29, %cst_32 : f32
      %98 = vector.broadcast %97 : i1 to vector<2x128xi1>
      %99 = vector.broadcast %98 : vector<2x128xi1> to vector<2x128xi1>
      %100 = arith.xori %96, %99 : vector<2x128xi1>
      %101 = arith.andi %100, %94 : vector<2x128xi1>
      %102 = vector.broadcast %cst_29 : f32 to vector<2x128xf32>
      %103 = arith.addf %92, %102 : vector<2x128xf32>
      %104 = arith.select %101, %103, %92 : vector<2x128xi1>, vector<2x128xf32>
      %cst_33 = arith.constant 6.000000e+00 : f32
      %105 = vector.broadcast %cst_33 : f32 to vector<2x128xf32>
      %106 = arith.mulf %104, %105 : vector<2x128xf32>
      %107 = arith.mulf %38, %56 : vector<2x128xf32>
      %cst_34 = arith.constant 5.000000e+00 : f32
      %108 = vector.broadcast %cst_34 : f32 to vector<2x128xf32>
      %109 = arith.addf %108, %106 : vector<2x128xf32>
      %cst_35 = arith.constant 6.000000e+00 : f32
      %110 = vector.broadcast %cst_35 : f32 to vector<2x128xf32>
      %111 = arith.remf %109, %110 : vector<2x128xf32>
      %cst_36 = arith.constant 0.000000e+00 : f32
      %112 = vector.broadcast %cst_36 : f32 to vector<2x128xf32>
      %113 = arith.cmpf one, %111, %112 : vector<2x128xf32>
      %cst_37 = arith.constant 0.000000e+00 : f32
      %114 = vector.broadcast %cst_37 : f32 to vector<2x128xf32>
      %115 = arith.cmpf olt, %111, %114 : vector<2x128xf32>
      %cst_38 = arith.constant 0.000000e+00 : f32
      %116 = arith.cmpf olt, %cst_35, %cst_38 : f32
      %117 = vector.broadcast %116 : i1 to vector<2x128xi1>
      %118 = vector.broadcast %117 : vector<2x128xi1> to vector<2x128xi1>
      %119 = arith.xori %115, %118 : vector<2x128xi1>
      %120 = arith.andi %119, %113 : vector<2x128xi1>
      %121 = vector.broadcast %cst_35 : f32 to vector<2x128xf32>
      %122 = arith.addf %111, %121 : vector<2x128xf32>
      %123 = arith.select %120, %122, %111 : vector<2x128xi1>, vector<2x128xf32>
      %cst_39 = arith.constant 4.000000e+00 : f32
      %124 = vector.broadcast %cst_39 : f32 to vector<2x128xf32>
      %125 = arith.subf %124, %123 : vector<2x128xf32>
      %126 = arith.minimumf %123, %125 : vector<2x128xf32>
      %cst_40 = arith.constant 0.000000e+00 : f32
      %cst_41 = arith.constant 1.000000e+00 : f32
      %127 = vector.broadcast %cst_40 : f32 to vector<2x128xf32>
      %128 = arith.maximumf %127, %126 : vector<2x128xf32>
      %129 = vector.broadcast %cst_41 : f32 to vector<2x128xf32>
      %130 = arith.minimumf %129, %128 : vector<2x128xf32>
      %131 = arith.mulf %107, %130 : vector<2x128xf32>
      %132 = arith.subf %38, %131 : vector<2x128xf32>
      %c0_42 = arith.constant 0 : index
      %c0_43 = arith.constant 0 : index
      %c0_44 = arith.constant 0 : index
      %c0_45 = arith.constant 0 : index
      %133 = vector.load %arg5[%c0_42, %c0_43, %c0_44, %c0_45] : memref<1x3x2x128xf32, #tpu.memory_space<vmem>>, vector<1x1x2x128xf32>
      %134 = vector.shape_cast %133 : vector<1x1x2x128xf32> to vector<2x128xf32>
      %135 = vector.shape_cast %132 : vector<2x128xf32> to vector<1x1x2x128xf32>
      tpu.vector_store %arg5[%c0_42, %c0_43, %c0_44, %c0_45], %135 {strides = array<i32>} : memref<1x3x2x128xf32, #tpu.memory_space<vmem>>, vector<1x1x2x128xf32>,
      %cst_46 = arith.constant 3.000000e+00 : f32
      %136 = vector.broadcast %cst_46 : f32 to vector<2x128xf32>
      %137 = arith.addf %136, %106 : vector<2x128xf32>
      %cst_47 = arith.constant 6.000000e+00 : f32
      %138 = vector.broadcast %cst_47 : f32 to vector<2x128xf32>
      %139 = arith.remf %137, %138 : vector<2x128xf32>
      %cst_48 = arith.constant 0.000000e+00 : f32
      %140 = vector.broadcast %cst_48 : f32 to vector<2x128xf32>
      %141 = arith.cmpf one, %139, %140 : vector<2x128xf32>
      %cst_49 = arith.constant 0.000000e+00 : f32
      %142 = vector.broadcast %cst_49 : f32 to vector<2x128xf32>
      %143 = arith.cmpf olt, %139, %142 : vector<2x128xf32>
      %cst_50 = arith.constant 0.000000e+00 : f32
      %144 = arith.cmpf olt, %cst_47, %cst_50 : f32
      %145 = vector.broadcast %144 : i1 to vector<2x128xi1>
      %146 = vector.broadcast %145 : vector<2x128xi1> to vector<2x128xi1>
      %147 = arith.xori %143, %146 : vector<2x128xi1>
      %148 = arith.andi %147, %141 : vector<2x128xi1>
      %149 = vector.broadcast %cst_47 : f32 to vector<2x128xf32>
      %150 = arith.addf %139, %149 : vector<2x128xf32>
      %151 = arith.select %148, %150, %139 : vector<2x128xi1>, vector<2x128xf32>
      %cst_51 = arith.constant 4.000000e+00 : f32
      %152 = vector.broadcast %cst_51 : f32 to vector<2x128xf32>
      %153 = arith.subf %152, %151 : vector<2x128xf32>
      %154 = arith.minimumf %151, %153 : vector<2x128xf32>
      %cst_52 = arith.constant 0.000000e+00 : f32
      %cst_53 = arith.constant 1.000000e+00 : f32
      %155 = vector.broadcast %cst_52 : f32 to vector<2x128xf32>
      %156 = arith.maximumf %155, %154 : vector<2x128xf32>
      %157 = vector.broadcast %cst_53 : f32 to vector<2x128xf32>
      %158 = arith.minimumf %157, %156 : vector<2x128xf32>
      %159 = arith.mulf %107, %158 : vector<2x128xf32>
      %160 = arith.subf %38, %159 : vector<2x128xf32>
      %c0_54 = arith.constant 0 : index
      %c1_55 = arith.constant 1 : index
      %c0_56 = arith.constant 0 : index
      %c0_57 = arith.constant 0 : index
      %161 = vector.load %arg5[%c0_54, %c1_55, %c0_56, %c0_57] : memref<1x3x2x128xf32, #tpu.memory_space<vmem>>, vector<1x1x2x128xf32>
      %162 = vector.shape_cast %161 : vector<1x1x2x128xf32> to vector<2x128xf32>
      %163 = vector.shape_cast %160 : vector<2x128xf32> to vector<1x1x2x128xf32>
      tpu.vector_store %arg5[%c0_54, %c1_55, %c0_56, %c0_57], %163 {strides = array<i32>} : memref<1x3x2x128xf32, #tpu.memory_space<vmem>>, vector<1x1x2x128xf32>,
      %cst_58 = arith.constant 1.000000e+00 : f32
      %164 = vector.broadcast %cst_58 : f32 to vector<2x128xf32>
      %165 = arith.addf %164, %106 : vector<2x128xf32>
      %cst_59 = arith.constant 6.000000e+00 : f32
      %166 = vector.broadcast %cst_59 : f32 to vector<2x128xf32>
      %167 = arith.remf %165, %166 : vector<2x128xf32>
      %cst_60 = arith.constant 0.000000e+00 : f32
      %168 = vector.broadcast %cst_60 : f32 to vector<2x128xf32>
      %169 = arith.cmpf one, %167, %168 : vector<2x128xf32>
      %cst_61 = arith.constant 0.000000e+00 : f32
      %170 = vector.broadcast %cst_61 : f32 to vector<2x128xf32>
      %171 = arith.cmpf olt, %167, %170 : vector<2x128xf32>
      %cst_62 = arith.constant 0.000000e+00 : f32
      %172 = arith.cmpf olt, %cst_59, %cst_62 : f32
      %173 = vector.broadcast %172 : i1 to vector<2x128xi1>
      %174 = vector.broadcast %173 : vector<2x128xi1> to vector<2x128xi1>
      %175 = arith.xori %171, %174 : vector<2x128xi1>
      %176 = arith.andi %175, %169 : vector<2x128xi1>
      %177 = vector.broadcast %cst_59 : f32 to vector<2x128xf32>
      %178 = arith.addf %167, %177 : vector<2x128xf32>
      %179 = arith.select %176, %178, %167 : vector<2x128xi1>, vector<2x128xf32>
      %cst_63 = arith.constant 4.000000e+00 : f32
      %180 = vector.broadcast %cst_63 : f32 to vector<2x128xf32>
      %181 = arith.subf %180, %179 : vector<2x128xf32>
      %182 = arith.minimumf %179, %181 : vector<2x128xf32>
      %cst_64 = arith.constant 0.000000e+00 : f32
      %cst_65 = arith.constant 1.000000e+00 : f32
      %183 = vector.broadcast %cst_64 : f32 to vector<2x128xf32>
      %184 = arith.maximumf %183, %182 : vector<2x128xf32>
      %185 = vector.broadcast %cst_65 : f32 to vector<2x128xf32>
      %186 = arith.minimumf %185, %184 : vector<2x128xf32>
      %187 = arith.mulf %107, %186 : vector<2x128xf32>
      %188 = arith.subf %38, %187 : vector<2x128xf32>
      %c0_66 = arith.constant 0 : index
      %c2_67 = arith.constant 2 : index
      %c0_68 = arith.constant 0 : index
      %c0_69 = arith.constant 0 : index
      %189 = vector.load %arg5[%c0_66, %c2_67, %c0_68, %c0_69] : memref<1x3x2x128xf32, #tpu.memory_space<vmem>>, vector<1x1x2x128xf32>
      %190 = vector.shape_cast %189 : vector<1x1x2x128xf32> to vector<2x128xf32>
      %191 = vector.shape_cast %188 : vector<2x128xf32> to vector<1x1x2x128xf32>
      tpu.vector_store %arg5[%c0_66, %c2_67, %c0_68, %c0_69], %191 {strides = array<i32>} : memref<1x3x2x128xf32, #tpu.memory_space<vmem>>, vector<1x1x2x128xf32>,
    } else {
    }
    %c4 = arith.constant 4 : index
    %20 = memref.load %arg2[%c4] : memref<5xi32, #tpu.memory_space<smem>>
    %c0_i32_10 = arith.constant 0 : i32
    %21 = arith.cmpi ne, %20, %c0_i32_10 : i32
    %22 = arith.extui %21 : i1 to i32
    %c0_i32_11 = arith.constant 0 : i32
    %23 = arith.cmpi ne, %22, %c0_i32_11 : i32
    scf.if %23 {
      %c0_15 = arith.constant 0 : index
      %c0_16 = arith.constant 0 : index
      %c0_17 = arith.constant 0 : index
      %c0_18 = arith.constant 0 : index
      %28 = vector.load %arg5[%c0_15, %c0_16, %c0_17, %c0_18] : memref<1x3x2x128xf32, #tpu.memory_space<vmem>>, vector<1x3x2x128xf32>
      %29 = vector.shape_cast %28 : vector<1x3x2x128xf32> to vector<3x2x128xf32>
      %30 = vector.extract_strided_slice %29 {offsets = [0, 0, 0], sizes = [1, 2, 128], strides = [1, 1, 1]} : vector<3x2x128xf32> to vector<1x2x128xf32>
      %31 = vector.shape_cast %30 : vector<1x2x128xf32> to vector<2x128xf32>
      %32 = vector.extract_strided_slice %29 {offsets = [1, 0, 0], sizes = [1, 2, 128], strides = [1, 1, 1]} : vector<3x2x128xf32> to vector<1x2x128xf32>
      %33 = vector.shape_cast %32 : vector<1x2x128xf32> to vector<2x128xf32>
      %34 = vector.extract_strided_slice %29 {offsets = [2, 0, 0], sizes = [1, 2, 128], strides = [1, 1, 1]} : vector<3x2x128xf32> to vector<1x2x128xf32>
      %35 = vector.shape_cast %34 : vector<1x2x128xf32> to vector<2x128xf32>
      %cst = arith.constant 2.989000e-01 : f32
      %36 = vector.broadcast %cst : f32 to vector<2x128xf32>
      %37 = arith.mulf %36, %31 : vector<2x128xf32>
      %cst_19 = arith.constant 5.870000e-01 : f32
      %38 = vector.broadcast %cst_19 : f32 to vector<2x128xf32>
      %39 = arith.mulf %38, %33 : vector<2x128xf32>
      %40 = arith.addf %37, %39 : vector<2x128xf32>
      %cst_20 = arith.constant 1.140000e-01 : f32
      %41 = vector.broadcast %cst_20 : f32 to vector<2x128xf32>
      %42 = arith.mulf %41, %35 : vector<2x128xf32>
      %43 = arith.addf %40, %42 : vector<2x128xf32>
      %cst_21 = arith.constant dense<0.000000e+00> : vector<128xf32>
      %44 = vector.multi_reduction <add>, %43, %cst_21 [0] : vector<2x128xf32> to vector<128xf32>
      %45 = vector.shape_cast %44 : vector<128xf32> to vector<1x1x1x128xf32>
      %c0_22 = arith.constant 0 : index
      %c0_23 = arith.constant 0 : index
      %c0_24 = arith.constant 0 : index
      %c0_25 = arith.constant 0 : index
      %46 = vector.load %arg6[%c0_22, %c0_23, %c0_24, %c0_25] : memref<1x1x1x128xf32, #tpu.memory_space<vmem>>, vector<1x1x1x128xf32>
      tpu.vector_store %arg6[%c0_22, %c0_23, %c0_24, %c0_25], %45 {strides = array<i32>} : memref<1x1x1x128xf32, #tpu.memory_space<vmem>>, vector<1x1x1x128xf32>,
    } else {
    }
    %c4_12 = arith.constant 4 : index
    %24 = memref.load %arg2[%c4_12] : memref<5xi32, #tpu.memory_space<smem>>
    %c0_i32_13 = arith.constant 0 : i32
    %25 = arith.cmpi eq, %24, %c0_i32_13 : i32
    %26 = arith.extui %25 : i1 to i32
    %c0_i32_14 = arith.constant 0 : i32
    %27 = arith.cmpi ne, %26, %c0_i32_14 : i32
    scf.if %27 {
      %cst = arith.constant 0.000000e+00 : f32
      %28 = vector.broadcast %cst : f32 to vector<1x1x1x128xf32>
      %c0_15 = arith.constant 0 : index
      %c0_16 = arith.constant 0 : index
      %c0_17 = arith.constant 0 : index
      %c0_18 = arith.constant 0 : index
      %29 = vector.load %arg6[%c0_15, %c0_16, %c0_17, %c0_18] : memref<1x1x1x128xf32, #tpu.memory_space<vmem>>, vector<1x1x1x128xf32>
      tpu.vector_store %arg6[%c0_15, %c0_16, %c0_17, %c0_18], %28 {strides = array<i32>} : memref<1x1x1x128xf32, #tpu.memory_space<vmem>>, vector<1x1x1x128xf32>,
    } else {
    }
    return
  }
  func.func @transform_0(%arg0: i32, %arg1: i32) -> i32 {
    %c0_i32 = arith.constant 0 : i32
    %c0_i32_0 = arith.constant 0 : i32
    return %c0_i32 : i32
  }
  func.func @transform_1(%arg0: i32, %arg1: i32) -> i32 {
    %c0_i32 = arith.constant 0 : i32
    %c0_i32_0 = arith.constant 0 : i32
    return %c0_i32 : i32
  }
  func.func @transform_2(%arg0: i32, %arg1: i32) -> (i32, i32, i32, i32) {
    %c0_i32 = arith.constant 0 : i32
    %c0_i32_0 = arith.constant 0 : i32
    %c0_i32_1 = arith.constant 0 : i32
    return %arg0, %c0_i32, %arg1, %c0_i32_0 : i32, i32, i32, i32
  }
  func.func @transform_3(%arg0: i32, %arg1: i32) -> (i32, i32, i32, i32) {
    %c0_i32 = arith.constant 0 : i32
    %c0_i32_0 = arith.constant 0 : i32
    %c0_i32_1 = arith.constant 0 : i32
    return %arg0, %c0_i32, %arg1, %c0_i32_0 : i32, i32, i32, i32
  }
  func.func @transform_4(%arg0: i32, %arg1: i32) -> (i32, i32, i32, i32) {
    %c0_i32 = arith.constant 0 : i32
    %c0_i32_0 = arith.constant 0 : i32
    %c0_i32_1 = arith.constant 0 : i32
    return %arg0, %arg1, %c0_i32, %c0_i32_0 : i32, i32, i32, i32
  }
}

</mosaic_0001>

<bundles_post_ra>
// kernel: tpu_custom_call.1
= control target key start
LH: loop header
LB: loop body
LE: loop exit
PB: predicated region body
PF: predicated region fallthrough
CT: control target
= control target key end

     0   :  { %s1383_s0 = inlined_call_operand.hbm [shape: s32[5], index: 0, kind: input, shape index: {}]   ;;  %s1384_s1 = inlined_call_operand.hbm [shape: f32[6], index: 1, kind: input, shape index: {}]   ;;  %s1385_s2 = inlined_call_operand.hbm [shape: f32[2,3,2,128], index: 2, kind: input, shape index: {}]   ;;  %s1386_s3 = inlined_call_operand.hbm [shape: f32[2,3,2,128], index: 3, kind: output, shape index: {0}]   ;;  %s1387_s4 = inlined_call_operand.hbm [shape: f32[2,1,1,128], index: 4, kind: output, shape index: {1}]  }
   0x1   :  { %1392 = sst [smem:[#allocation17_spill]] %s1383_s0 }
   0x2   :  { %10 = vsyncpa [#allocation5], 0 }
   0x3   :  { %11 = vsyncpa [#allocation7], 0 }
   0x4   :  { %12 = vsyncpa [#allocation3], 0 }
   0x5   :  { %14 = vsyncpa [#allocation3 + $0x1], 0 }
   0x6   :  { %15 = vsyncpa [#allocation4], 0 }
   0x7   :  { %17 = vsyncpa [#allocation4 + $0x1], 0 }
   0x8   :  { %18 = vsyncpa [#allocation11], 0 }
   0x9   :  { %20 = vsyncpa [#allocation11 + $0x1], 0  ;;  %s1055_s15 = smov 0   ;;  %s1057_s16 = smov 0  }
   0xa   :  { %s1059_s17 = smov 0   ;;  %s1061_s18 = smov 0  }
   0xb   :  { %s1063_s19 = smov 0   ;;  %s1065_s20 = smov 0  }
   0xc LB: > { %s706_s21 = sadd.s32 4294967295, %s1018_s20   ;;  %s707_s22 = sadd.s32 4294967294, %s1018_s20   ;;  %s1018_s20 = sphi %s1065_s20, %s26_s20   ;;  %s1014_s19 = sphi %s1063_s19, %s1415_s19   ;;  %s1010_s18 = sphi %s1061_s18, %s1414_s18   ;;  %s1006_s17 = sphi %s1059_s17, %s1413_s17   ;;  %s1002_s16 = sphi %s1057_s16, %s1412_s16   ;;  %s998_s15 = sphi %s1055_s15, %s1411_s15  }
   0xd   : > { %p96_p0 = scmp.ne.s32.totalorder %s1006_s17, %s1002_s16  ;;  %p97_p1 = scmp.eq.s32.totalorder %s1018_s20, 0 }
   0xe   : > { %p102_p2 = scmp.ne.s32.totalorder %s1002_s16, %s998_s15  ;;  %p1093_p3 = scmp.eq.s32.totalorder %s706_s21, 0 }
   0xf   : > { %p128_p4 = scmp.eq.s32.totalorder %s706_s21, 1  ;;  %p98_p5 = por %p97_p1, %p96_p0 }
  0x10   : > { %s1393_s24 = scalar_select %p1093_p3, 1, 0 }
  0x11   : > { %p134_p6 = scmp.eq.s32.totalorder %s707_s22, 1  ;;  %p1099_p7 = por %p1093_p3, %p102_p2 }
  0x12   : > { %p1103_p8 = por %p128_p4, %p96_p0  ;;  %p708_p10 = scmp.ge.s32.totalorder %s1018_s20, 1 }
  0x13   : > { %s1394_s25 = scalar_select %p1099_p7, 1, 0 }
  0x14   : > { %s1395_s26 = scalar_select %p1103_p8, 1, 0 }
  0x15   : > { %p1107_p9 = por %p134_p6, %p102_p2  ;;  %p169_p11 = scmp.lt.s32.totalorder %s1018_s20, 3 }
  0x16   : > { %p777_p1 = scmp.lt.s32.totalorder %s1018_s20, 2  ;;  %p1399_p0 = scmp.ne.s32.totalorder %s1393_s24, 0 }
  0x17   : > { %s1396_s27 = scalar_select %p1107_p9, 1, 0 }
  0x18   : > { %p1114_p13 = pnand %p708_p10, %p169_p11  ;;  %p1121_p7 = pnand %p777_p1, %p98_p5 }
  0x19   : > { %s38_s6 = sadd.s32 1, %s1014_s19  ;;  %s1402_s0 = sld [smem:[#allocation17_spill]] }
  0x1a   : > { %p757_p3 = pneg %p1114_p13  ;;  %p1133_p4 = scmp.ge.s32.totalorder %s38_s6, 2 }
  0x1c   : > { %p1128_p2 = pnand %p757_p3, %p1399_p0 }
  0x1e   : > { %p842_p6 = pneg %p1128_p2 }
  0x1f   : > { %s840_s10 = scalar_lea.hbm %s1402_s0, 16 }
  0x20   : > { %p841_p5 = scmp.ne.s32.totalorder %s1402_s0, %s840_s10  ;;  %p847_p11 = scmp.lt.u32.totalorder %s840_s10, %s1402_s0 }
  0x22   : > { %p843_p3 = pnand %p842_p6, %p841_p5 }
  0x24   : > { %p844_p10 = pneg %p843_p3 }
  0x26   : > { %p849_p1 = pnand %p847_p11, %p844_p10 }
  0x28   : > { %852 = shalt.err (!%p849_p1)
}
  0x29   : > { %s1020_s21 = smov [#allocation2]   ;;  %s853_s12 = scalar_lea.hbm %s1384_s1, 16 }
  0x2a   : > { %760 = dma.hbm_to_smem (!%p1128_p2), %s1402_s0, 16, %s1020_s21, [#allocation5]  }
  0x2b   : > { %p854_p0 = scmp.ne.s32.totalorder %s1384_s1, %s853_s12  ;;  %p860_p10 = scmp.lt.u32.totalorder %s853_s12, %s1384_s1 }
  0x2d   : > { %p856_p5 = pnand %p854_p0, %p842_p6 }
  0x2f   : > { %p857_p3 = pneg %p856_p5 }
  0x31   : > { %p862_p11 = pnand %p860_p10, %p857_p3 }
  0x33   : > { %865 = shalt.err (!%p862_p11)
}
  0x34   : > { %s1021_s14 = smov [#allocation6]   ;;  %s1417_s6 = smov (%p1133_p4, %s38_s6), 0 }
  0x35   : > { %763 = dma.hbm_to_smem (!%p1128_p2), %s1384_s1, 16, %s1021_s14, [#allocation7]  }
  0x36   : > { %s1403_s23 = sand.u32 1, %s1006_s17   ;;  %s84_s5 = ssub.s32 %s1014_s19, %s1417_s6 }
  0x37   : > { %s739_s30 = smul.u32 6, %s1403_s23  ;;  %p87_p6 = scmp.eq.s32.totalorder %s84_s5, 0 }
  0x38   : > { %s740_s8 = smul.u32 96, %s1014_s19  ;;  %s1404_s7 = sadd.s32 1, %s1006_s17 }
  0x39   : > { %s204_s10 = scalar_lea.vmem [#allocation8], %s739_s30  ;;  %s1405_s21 = smov %s1403_s23 }
  0x3a   : > { %s1179_s12 = scalar_lea.hbm %s1385_s2, %s740_s8  ;;  %s212_s13 = sshll.u32 %s204_s10, 4  ;;  %s1186_s13 = int_to_ptr.vmem [resolvable:$true] %s212_s13 }
  0x3b   : > { %s1184_s14 = scalar_select %p87_p6, %s1006_s17, %s1404_s7  }
  0x3c   : > { %s1190_s22 = scalar_lea.sflag [#allocation3], %s1405_s21  ;;  %s866_s23 = scalar_lea.hbm %s1179_s12, 96 }
  0x3d   : > { %p867_p2 = scmp.ne.s32.totalorder %s1179_s12, %s866_s23  ;;  %p868_p4 = pneg %p1121_p7 }
  0x3e   : > { %s871_s30 = scalar_lea.hbm %s1385_s2, 192  ;;  %p872_p5 = scmp.lt.u32.totalorder %s1179_s12, %s1385_s2 }
  0x3f   : > { %p869_p1 = pnand %p868_p4, %p867_p2  ;;  %p873_p3 = scmp.lt.u32.totalorder %s871_s30, %s866_s23 }
  0x40   : > { %p875_p11 = scmp.lt.u32.totalorder %s866_s23, %s1179_s12 }
  0x41   : > { %p870_p0 = pneg %p869_p1  ;;  %p874_p10 = por %p873_p3, %p872_p5 }
  0x43   : > { %p876_p6 = por %p875_p11, %p874_p10 }
  0x45   : > { %p877_p12 = pnand %p876_p6, %p870_p0 }
  0x47   : > { %880 = shalt.err (!%p877_p12)
}
  0x48   : > { %s881_s10 = scalar_lea.vmem %s1186_s13, 96  ;;  %s1022_s7 = smov [#allocation8]  }
  0x49   : > { %p882_p2 = scmp.ne.s32.totalorder %s1186_s13, %s881_s10  ;;  %s886_s21 = sshll.u32 %s1022_s7, 4  ;;  %s887_s21 = int_to_ptr.vmem [resolvable:$false] %s886_s21 }
  0x4a   : > { %s888_s5 = scalar_lea.vmem %s887_s21, 192  ;;  %p889_p8 = scmp.lt.s32.totalorder %s1186_s13, %s887_s21 }
  0x4b   : > { %p884_p1 = pnand %p882_p2, %p868_p4  ;;  %p890_p5 = scmp.lt.s32.totalorder %s888_s5, %s881_s10 }
  0x4d   : > { %p885_p9 = pneg %p884_p1  ;;  %p891_p3 = por %p890_p5, %p889_p8 }
  0x4f   : > { %p892_p10 = pnand %p891_p3, %p885_p9 }
  0x51   : > { %895 = shalt.err (!%p892_p10)
}
  0x52   : > { %s1023_s23 = smov 32   ;;  %s1024_s8 = smov 2  }
  0x53   : > { %767 = dma.hbm_to_vmem [thread:$0]  (!%p1121_p7), %s1179_s12, 96, %s1186_s13, %s1190_s22, %s1023_s23, %s1023_s23, %s1024_s8  }
  0x54   : > { %224 = sbr.rel (%p1114_p13) target bundleno = 385 (0x181), region = 32  ;;  %p1406_p12 = scmp.ne.s32.totalorder (!%p1114_p13), %s1393_s24, 0 }
  0x5b   : > { %977 = dma.done.wait (%p1406_p12), [#allocation5], 16  }
  0x5c   : > { %979 = vsyncadd (%p1406_p12), [#allocation5], 4294967280 }
  0x5d   : > { %981 = dma.done.wait (%p1406_p12), [#allocation7], 16  }
  0x5e   : > { %983 = vsyncadd (%p1406_p12), [#allocation7], 4294967280  ;;  %s1229_s30 = sand.u32 1, %s1002_s16   ;;  %p1407_p7 = scmp.ne.s32.totalorder %s1394_s25, 0 }
  0x5f   : > { %s741_s28 = smul.u32 6, %s1229_s30  ;;  %s235_s29 = scalar_lea.sflag [#allocation3], %s1229_s30 }
  0x61   : > { %s1233_s12 = scalar_lea.vmem [#allocation8], %s741_s28 }
  0x62   : > { %985 = dma.done.wait (%p1407_p7), %s235_s29, 96  }
  0x63   : > { %987 = vsyncadd (%p1407_p7), %s235_s29, 4294967200 }
  0x64   : > { %243 = sfence }
  0x65   : > { %s268_s13 = sld [smem:[#allocation2]]  ;;  %s1239_s24 = scalar_lea.vmem [#allocation9], %s741_s28 }
  0x66   : > { %s1242_s22 = scalar_lea.vmem [#allocation10], %s1229_s30 }
  0x6b   : > { %p716_p8 = scmp.eq.s32.totalorder %s268_s13, 0 }
  0x6c   : > { %s273_s9 = sld [smem:[#allocation6]] (!%p716_p8)  ;;  %v274_v0 = vld [vmem:[%s1233_s12] sm:$0x3] (!%p716_p8)  ;;  %v275_v1 = vld [vmem:[%s1233_s12 + $0x2] sm:$0x3] (!%p716_p8) }
  0x6d   : > { %272 = sbr.rel (%p716_p8) target bundleno = 123 (0x7b), region = 48  ;;  %v276_v2 = vld [vmem:[%s1233_s12 + $0x4] sm:$0x3] (!%p716_p8) }
  0x72   : > { %v277_v3 = vstv (!%p716_p8), %s273_s9 }
  0x73   : > { %v278_v4 = vmul.f32 (!%p716_p8), %v277_v3, %v274_v0  ;;  %v279_v5 = vmul.f32 (!%p716_p8), %v277_v3, %v275_v1  ;;  %v280_v6 = vmul.f32 (!%p716_p8), %v277_v3, %v276_v2 }
  0x75   : > { %v281_v7 = vmax.f32 %v278_v4, 0.0  ;;  %v282_v8 = vmax.f32 %v279_v5, 0.0  ;;  %v283_v9 = vmax.f32 %v280_v6, 0.0 }
  0x77   : > { %v284_v10 = vmin.f32 %v281_v7, 1.0  ;;  %v285_v11 = vmin.f32 %v282_v8, 1.0  ;;  %v286_v12 = vmin.f32 %v283_v9, 1.0 }
  0x79   : > { %287 = vst [vmem:[%s1239_s24] sm:$0x3] %v284_v10  ;;  %288 = vst [vmem:[%s1239_s24 + $0x2] sm:$0x3] %v285_v11 }
  0x7a   : > { %289 = vst [vmem:[%s1239_s24 + $0x4] sm:$0x3] %v286_v12 }
  0x7b PF: > { %s290_s25 = sld [smem:[#allocation2]] }
  0x81   : > { %p717_p9 = scmp.ne.s32.totalorder %s290_s25, 0 }
  0x82   : > { %v295_v13 = vld [vmem:[%s1233_s12] sm:$0xf] (!%p717_p9)   ;;  %v297_v14 = vld [vmem:[%s1233_s12 + $0x4] sm:$0x3] (!%p717_p9) }
  0x83   : > { %294 = sbr.rel (%p717_p9) target bundleno = 138 (0x8a), region = 52  ;;  %298 = vst [vmem:[%s1239_s24] sm:$0xf] (!%p717_p9), %v295_v13   ;;  %300 = vst [vmem:[%s1239_s24 + $0x4] sm:$0x3] (!%p717_p9), %v297_v14 }
  0x8a PF: > { %s718_s11 = sld [smem:[#allocation2 + $0x1]] }
  0x90   : > { %p719_p13 = scmp.eq.s32.totalorder %s718_s11, 0 }
  0x91   : > { %s720_s10 = sld [smem:[#allocation6 + $0x1]] (!%p719_p13)  ;;  %s307_s7 = sadd.s32 (!%p719_p13), 4, %s1010_s18  ;;  %v309_v15 = vld [vmem:[%s1239_s24] sm:$0x3] (!%p719_p13)  ;;  %v310_v16 = vld [vmem:[%s1239_s24 + $0x2] sm:$0x3] (!%p719_p13) }
  0x92   : > { %305 = sbr.rel (%p719_p13) target bundleno = 164 (0xa4), region = 56  ;;  %s308_s21 = sld [smem:[#allocation6 + %s307_s7]] (!%p719_p13)  ;;  %v311_v17 = vld [vmem:[%s1239_s24 + $0x4] sm:$0x3] (!%p719_p13) }
  0x97   : > { %v312_v18 = vstv (!%p719_p13), %s720_s10  ;;  %s316_s5 = ssub.f32 (!%p719_p13), 1.0, %s720_s10 }
  0x98   : > { %v313_v19 = vmul.f32 (!%p719_p13), %v312_v18, %v309_v15  ;;  %v314_v20 = vmul.f32 (!%p719_p13), %v312_v18, %v310_v16  ;;  %v315_v21 = vmul.f32 (!%p719_p13), %v312_v18, %v311_v17 }
  0x99   : > { %s317_s23 = smul.f32 %s316_s5, %s308_s21 }
  0x9b   : > { %v318_v22 = vstv %s317_s23 }
  0x9c   : > { %v319_v23 = vadd.f32 %v318_v22, %v313_v19  ;;  %v320_v24 = vadd.f32 %v318_v22, %v314_v20  ;;  %v321_v25 = vadd.f32 %v318_v22, %v315_v21 }
  0x9e   : > { %v322_v26 = vmax.f32 %v319_v23, 0.0  ;;  %v323_v27 = vmax.f32 %v320_v24, 0.0  ;;  %v324_v28 = vmax.f32 %v321_v25, 0.0 }
  0xa0   : > { %v325_v29 = vmin.f32 %v322_v26, 1.0  ;;  %v326_v30 = vmin.f32 %v323_v27, 1.0  ;;  %v327_v31 = vmin.f32 %v324_v28, 1.0 }
  0xa2   : > { %328 = vst [vmem:[%s1239_s24] sm:$0x3] %v325_v29  ;;  %329 = vst [vmem:[%s1239_s24 + $0x2] sm:$0x3] %v326_v30 }
  0xa3   : > { %330 = vst [vmem:[%s1239_s24 + $0x4] sm:$0x3] %v327_v31 }
  0xa4 PF: > { %s721_s8 = sld [smem:[#allocation2 + $0x2]] }
  0xaa   : > { %p722_p4 = scmp.eq.s32.totalorder %s721_s8, 0 }
  0xab   : > { %s723_s28 = sld [smem:[#allocation6 + $0x2]] (!%p722_p4)  ;;  %v337_v32 = vld [vmem:[%s1239_s24] sm:$0x3] (!%p722_p4)  ;;  %v338_v33 = vld [vmem:[%s1239_s24 + $0x2] sm:$0x3] (!%p722_p4) }
  0xac   : > { %335 = sbr.rel (%p722_p4) target bundleno = 190 (0xbe), region = 60  ;;  %v339_v34 = vld [vmem:[%s1239_s24 + $0x4] sm:$0x3] (!%p722_p4)  ;;  %v340_v35 = vmul.f32 (!%p722_p4), 0.2989, %v337_v32 }
  0xad   : > { %v341_v36 = vmul.f32 (!%p722_p4), 0.587, %v338_v33  ;;  %v343_v37 = vmul.f32 (!%p722_p4), 0.114, %v339_v34 }
  0xaf   : > { %v342_v38 = vadd.f32 (!%p722_p4), %v341_v36, %v340_v35 }
  0xb1   : > { %v344_v39 = vadd.f32 (!%p722_p4), %v343_v37, %v342_v38  ;;  %v345_v40 = vstv (!%p722_p4), %s723_s28  ;;  %s347_s29 = ssub.f32 (!%p722_p4), 1.0, %s723_s28 }
  0xb2   : > { %v346_v41 = vmul.f32 (!%p722_p4), %v345_v40, %v337_v32  ;;  %v354_v42 = vmul.f32 (!%p722_p4), %v345_v40, %v338_v33  ;;  %v360_v43 = vmul.f32 (!%p722_p4), %v345_v40, %v339_v34 }
  0xb3   : > { %v348_v44 = vstv %s347_s29 }
  0xb4   : > { %v349_v45 = vmul.f32 %v348_v44, %v344_v39 }
  0xb6   : > { %v350_v46 = vadd.f32 %v349_v45, %v346_v41  ;;  %v355_v47 = vadd.f32 %v354_v42, %v349_v45  ;;  %v361_v48 = vadd.f32 %v360_v43, %v349_v45 }
  0xb8   : > { %v351_v49 = vmax.f32 %v350_v46, 0.0  ;;  %v356_v50 = vmax.f32 %v355_v47, 0.0  ;;  %v362_v51 = vmax.f32 %v361_v48, 0.0 }
  0xba   : > { %v352_v52 = vmin.f32 %v351_v49, 1.0  ;;  %v357_v53 = vmin.f32 %v356_v50, 1.0  ;;  %v363_v54 = vmin.f32 %v362_v51, 1.0 }
  0xbc   : > { %353 = vst [vmem:[%s1239_s24] sm:$0x3] %v352_v52  ;;  %724 = vst [vmem:[%s1239_s24 + $0x2] sm:$0x3] %v357_v53 }
  0xbd   : > { %725 = vst [vmem:[%s1239_s24 + $0x4] sm:$0x3] %v363_v54 }
  0xbe PF: > { %s726_s12 = sld [smem:[#allocation2 + $0x3]] }
  0xc4   : > { %p727_p0 = scmp.eq.s32.totalorder %s726_s12, 0 }
  0xc5   : > { %v372_v55 = vld [vmem:[%s1239_s24] sm:$0x3] (!%p727_p0)  ;;  %v373_v56 = vld [vmem:[%s1239_s24 + $0x2] sm:$0x3] (!%p727_p0)  ;;  %v374_v57 = vld [vmem:[%s1239_s24 + $0x4] sm:$0x3] (!%p727_p0) }
  0xc6   : > { %370 = sbr.rel (%p727_p0) target bundleno = 292 (0x124), region = 64  ;;  %v375_v58 = vmax.f32 (!%p727_p0), %v372_v55, %v373_v56  ;;  %v377_v59 = vmin.f32 (!%p727_p0), %v372_v55, %v373_v56  ;;  %s728_s13 = sld [smem:[#allocation6 + $0x3]] (!%p727_p0) }
  0xc8   : > { %v1270_v60 = vmax.f32 (!%p727_p0), %v375_v58, %v374_v57  ;;  %v378_v61 = vmin.f32 (!%p727_p0), %v377_v59, %v374_v57 }
  0xca   : > { %vm379_vm0 = vcmp.eq.f32.partialorder (!%p727_p0), %v1270_v60, %v378_v61  ;;  %v1274_v62 = vsub.f32 (!%p727_p0), %v1270_v60, %v378_v61  ;;  %v392_v3 = vsub.f32 (!%p727_p0), %v1270_v60, %v372_v55  ;;  %v394_v4 = vsub.f32 (!%p727_p0), %v1270_v60, %v373_v56 }
  0xcb   : > { %v396_v5 = vsub.f32 (!%p727_p0), %v1270_v60, %v374_v57  ;;  %vm399_vm1 = vcmp.eq.f32.partialorder (!%p727_p0), %v1270_v60, %v373_v56  ;;  %vm400_vm2 = vcmp.ne.f32.partialorder (!%p727_p0), %v1270_v60, %v372_v55  ;;  %vm402_vm3 = vcmp.ne.f32.partialorder (!%p727_p0), %v1270_v60, %v373_v56 }
  0xcc   : > { %v382_v63 = vsel (!%p727_p0), %vm379_vm0, 1.0, %v1274_v62  ;;  %vm398_vm4 = vcmp.eq.f32.partialorder (!%p727_p0), %v1270_v60, %v372_v55  ;;  %vm401_vm5 = vmand (!%p727_p0), %vm399_vm1, %vm400_vm2  ;;  %v416_v21 = vstv (!%p727_p0), %s728_s13  ;;  %v381_v29 = vsel (!%p727_p0), %vm379_vm0, 1.0, %v1270_v60 }
  0xcd   : > { %836 = vrcp.f32 %v382_v63  ;;  %vm403_vm6 = vmand %vm402_vm3, %vm400_vm2 }
  0xce   : > { %838 = vrcp.f32 %v381_v29 }
  0xd7   : > { %v837_v0 = vpop.eup %836 }
  0xd8   : > { %v388_v1 = vmul.f32 %v837_v0, %v382_v63  ;;  %v839_v41 = vpop.eup %838 }
  0xd9   : > { %v384_v47 = vmul.f32 %v839_v41, %v381_v29 }
  0xda   : > { %v389_v2 = vsub.f32 2.0, %v388_v1 }
  0xdb   : > { %v385_v54 = vsub.f32 2.0, %v384_v47 }
  0xdc   : > { %v390_v6 = vmul.f32 %v837_v0, %v389_v2 }
  0xde   : > { %v393_v7 = vmul.f32 %v392_v3, %v390_v6  ;;  %v395_v8 = vmul.f32 %v394_v4, %v390_v6  ;;  %v397_v9 = vmul.f32 %v396_v5, %v390_v6  ;;  %v386_v5 = vmul.f32 %v839_v41, %v385_v54 }
  0xe0   : > { %v404_v10 = vsub.f32 %v397_v9, %v395_v8  ;;  %v406_v11 = vadd.f32 2.0, %v393_v7  ;;  %v410_v12 = vadd.f32 4.0, %v395_v8 }
  0xe2   : > { %v405_v13 = vsel %vm398_vm4, %v404_v10, 0.0  ;;  %v407_v14 = vsub.f32 %v406_v11, %v397_v9  ;;  %v411_v15 = vsub.f32 %v410_v12, %v393_v7  ;;  %v391_v11 = vmul.f32 %v386_v5, %v1274_v62 }
  0xe4   : > { %v408_v16 = vsel %vm401_vm5, %v407_v14, 0.0  ;;  %v412_v17 = vsel %vm403_vm6, %v411_v15, 0.0 }
  0xe5   : > { %v409_v18 = vadd.f32 %v408_v16, %v405_v13 }
  0xe7   : > { %v413_v19 = vadd.f32 %v412_v17, %v409_v18 }
  0xe9   : > { %v414_v20 = vmul.f32 0.16666667, %v413_v19  ;;  %v434_v19 = vmul.f32 %v391_v11, %v1270_v60 }
  0xeb   : > { %v415_v22 = vadd.f32 1.0, %v414_v20 }
  0xed   : > { %v417_v23 = vadd.f32 %v416_v21, %v415_v22 }
  0xef   : > { %v418_v24 = vand.u32 2147483647, %v417_v23  ;;  %v426_v27 = vand.u32 2147483648, %v417_v23 }
  0xf1   : > { %v421_v25 = vfloor.f32 %v418_v24 }
  0xf3   : > { %v422_v26 = vsub.f32 %v418_v24, %v421_v25 }
  0xf5   : > { %vm423_vm7 = vcmp.eq.f32.partialorder %v422_v26, 1.0 }
  0xf6   : > { %v424_v28 = vsel %vm423_vm7, 0.0, %v422_v26 }
  0xf7   : > { %v425_v30 = vand.u32 2147483647, %v424_v28 }
  0xf9   : > { %v427_v31 = vor.u32 %v426_v27, %v425_v30 }
  0xfb   : > { %vm428_vm8 = vcmp.ne.f32.partialorder %v427_v31, 0.0  ;;  %vm429_vm9 = vcmp.lt.f32.partialorder %v427_v31, 0.0  ;;  %v431_v32 = vadd.f32 1.0, %v427_v31 }
  0xfc   : > { %vm430_vm10 = vmand %vm429_vm9, %vm428_vm8 }
  0xfd   : > { %v432_v33 = vsel %vm430_vm10, %v431_v32, %v427_v31 }
  0xfe   : > { %v433_v34 = vmul.f32 6.0, %v432_v33 }
 0x100   : > { %v435_v35 = vadd.f32 5.0, %v433_v34  ;;  %v459_v36 = vadd.f32 3.0, %v433_v34  ;;  %v484_v37 = vadd.f32 1.0, %v433_v34 }
 0x102   : > { %v436_v38 = vand.u32 2147483647, %v435_v35  ;;  %v460_v39 = vand.u32 2147483647, %v459_v36  ;;  %v485_v40 = vand.u32 2147483647, %v484_v37 }
 0x103   : > { %v445_v56 = vand.u32 2147483648, %v435_v35  ;;  %v469_v57 = vand.u32 2147483648, %v459_v36  ;;  %v494_v61 = vand.u32 2147483648, %v484_v37 }
 0x104   : > { %v438_v42 = vmul.f32 0.16666667, %v436_v38  ;;  %v462_v43 = vmul.f32 0.16666667, %v460_v39  ;;  %v487_v44 = vmul.f32 0.16666667, %v485_v40 }
 0x106   : > { %v439_v45 = vfloor.f32 %v438_v42  ;;  %v463_v46 = vfloor.f32 %v462_v43  ;;  %v488_v48 = vfloor.f32 %v487_v44 }
 0x108   : > { %v440_v49 = vmul.f32 6.0, %v439_v45  ;;  %v464_v50 = vmul.f32 6.0, %v463_v46  ;;  %v489_v51 = vmul.f32 6.0, %v488_v48 }
 0x10a   : > { %v441_v52 = vsub.f32 %v436_v38, %v440_v49  ;;  %v465_v53 = vsub.f32 %v460_v39, %v464_v50  ;;  %v490_v55 = vsub.f32 %v485_v40, %v489_v51 }
 0x10c   : > { %vm442_vm11 = vcmp.eq.f32.partialorder %v441_v52, 6.0  ;;  %vm466_vm12 = vcmp.eq.f32.partialorder %v465_v53, 6.0  ;;  %vm491_vm13 = vcmp.eq.f32.partialorder %v490_v55, 6.0 }
 0x10d   : > { %v443_v58 = vsel %vm442_vm11, 0.0, %v441_v52  ;;  %v467_v59 = vsel %vm466_vm12, 0.0, %v465_v53  ;;  %v492_v1 = vsel %vm491_vm13, 0.0, %v490_v55 }
 0x10e   : > { %v444_v63 = vand.u32 2147483647, %v443_v58  ;;  %v468_v0 = vand.u32 2147483647, %v467_v59  ;;  %v493_v2 = vand.u32 2147483647, %v492_v1 }
 0x110   : > { %v446_v3 = vor.u32 %v445_v56, %v444_v63  ;;  %v470_v4 = vor.u32 %v469_v57, %v468_v0  ;;  %v495_v6 = vor.u32 %v494_v61, %v493_v2 }
 0x112   : > { %vm447_vm14 = vcmp.ne.f32.partialorder %v446_v3, 0.0  ;;  %vm448_vm15 = vcmp.lt.f32.partialorder %v446_v3, 0.0  ;;  %v450_v7 = vadd.f32 6.0, %v446_v3  ;;  %vm471_vm0 = vcmp.ne.f32.partialorder %v470_v4, 0.0 }
 0x113   : > { %vm449_vm1 = vmand %vm448_vm15, %vm447_vm14  ;;  %vm472_vm2 = vcmp.lt.f32.partialorder %v470_v4, 0.0  ;;  %v474_v8 = vadd.f32 6.0, %v470_v4  ;;  %vm496_vm3 = vcmp.ne.f32.partialorder %v495_v6, 0.0  ;;  %vm497_vm4 = vcmp.lt.f32.partialorder %v495_v6, 0.0 }
 0x114   : > { %v451_v9 = vsel %vm449_vm1, %v450_v7, %v446_v3  ;;  %vm473_vm5 = vmand %vm472_vm2, %vm471_vm0  ;;  %v499_v10 = vadd.f32 6.0, %v495_v6 }
 0x115   : > { %v452_v12 = vsub.f32 4.0, %v451_v9  ;;  %v475_v13 = vsel %vm473_vm5, %v474_v8, %v470_v4  ;;  %vm498_vm6 = vmand %vm497_vm4, %vm496_vm3 }
 0x116   : > { %v476_v14 = vsub.f32 4.0, %v475_v13  ;;  %v500_v15 = vsel %vm498_vm6, %v499_v10, %v495_v6 }
 0x117   : > { %v453_v16 = vmin.f32 %v451_v9, %v452_v12  ;;  %v501_v17 = vsub.f32 4.0, %v500_v15 }
 0x118   : > { %v477_v18 = vmin.f32 %v475_v13, %v476_v14 }
 0x119   : > { %v454_v20 = vmax.f32 %v453_v16, 0.0  ;;  %v502_v21 = vmin.f32 %v500_v15, %v501_v17 }
 0x11a   : > { %v478_v22 = vmax.f32 %v477_v18, 0.0 }
 0x11b   : > { %v455_v23 = vmin.f32 %v454_v20, 1.0  ;;  %v503_v24 = vmax.f32 %v502_v21, 0.0 }
 0x11c   : > { %v479_v25 = vmin.f32 %v478_v22, 1.0 }
 0x11d   : > { %v456_v62 = vmul.f32 %v455_v23, %v434_v19  ;;  %v504_v26 = vmin.f32 %v503_v24, 1.0 }
 0x11e   : > { %v480_v27 = vmul.f32 %v479_v25, %v434_v19 }
 0x11f   : > { %v457_v28 = vsub.f32 %v1270_v60, %v456_v62  ;;  %v505_v29 = vmul.f32 %v504_v26, %v434_v19 }
 0x120   : > { %v481_v30 = vsub.f32 %v1270_v60, %v480_v27 }
 0x121   : > { %458 = vst [vmem:[%s1239_s24] sm:$0x3] %v457_v28  ;;  %v506_v31 = vsub.f32 %v1270_v60, %v505_v29 }
 0x122   : > { %729 = vst [vmem:[%s1239_s24 + $0x2] sm:$0x3] %v481_v30 }
 0x123   : > { %730 = vst [vmem:[%s1239_s24 + $0x4] sm:$0x3] %v506_v31 }
 0x124 PF: > { %s731_s9 = sld [smem:[#allocation2 + $0x4]] }
 0x12a   : > { %p732_p11 = scmp.eq.s32.totalorder %s731_s9, 0 }
 0x12b   : > { %v514_v32 = vld [vmem:[%s1239_s24] sm:$0x3] (!%p732_p11)  ;;  %v515_v33 = vld [vmem:[%s1239_s24 + $0x2] sm:$0x3] (!%p732_p11)  ;;  %v516_v34 = vld [vmem:[%s1239_s24 + $0x4] sm:$0x3] (!%p732_p11) }
 0x12c   : > { %513 = sbr.rel (%p732_p11) target bundleno = 320 (0x140), region = 68  ;;  %v517_v35 = vmul.f32 (!%p732_p11), 0.2989, %v514_v32  ;;  %v518_v36 = vmul.f32 (!%p732_p11), 0.587, %v515_v33  ;;  %vm522_vm7 = vcmask (!%p732_p11), 1041408  }
 0x12d   : > { %v520_v37 = vmul.f32 (!%p732_p11), 0.114, %v516_v34 }
 0x12e   : > { %v519_v38 = vadd.f32 (!%p732_p11), %v518_v36, %v517_v35 }
 0x130   : > { %v521_v39 = vadd.f32 (!%p732_p11), %v520_v37, %v519_v38 }
 0x132   : > { %v523_v60 = vsel (!%p732_p11), %vm522_vm7, %v521_v39, 0.0 }
 0x133   : > { %v524_v40 = vrot.slane %v523_v60, 4 }
 0x135   : > { %v525_v41 = vadd.f32 %v524_v40, %v523_v60 }
 0x137   : > { %v526_v42 = vrot.slane %v525_v41, 2 }
 0x139   : > { %v527_v43 = vadd.f32 %v526_v42, %v525_v41 }
 0x13b   : > { %v528_v44 = vrot.slane %v527_v43, 1 }
 0x13d   : > { %v529_v45 = vadd.f32 %v528_v44, %v527_v43 }
 0x13f   : > { %530 = vst [vmem:[%s1242_s22] sm:$0x1] %v529_v45 }
 0x140 PF: > { %s733_s25 = sld [smem:[#allocation2 + $0x4]] }
 0x146   : > { %p734_p6 = scmp.ne.s32.totalorder %s733_s25, 0 }
 0x147   : > { %v1025_v46 = vmov (!%p734_p6), 0.0  }
 0x148   : > { %535 = sbr.rel (%p734_p6) target bundleno = 335 (0x14f), region = 72  ;;  %536 = vst [vmem:[%s1242_s22] sm:$0x1] (!%p734_p6), %v1025_v46 }
 0x14f PF: > { %s742_s11 = smul.u32 96, %s1010_s18  ;;  %s556_s10 = sshll.u32 %s1239_s24, 4  ;;  %s1309_s10 = int_to_ptr.vmem [resolvable:$true] %s556_s10 }
 0x150   : > { %s538_s23 = scalar_lea.sflag [#allocation4], %s1229_s30  ;;  %s896_s8 = scalar_lea.vmem %s1309_s10, 96 }
 0x151   : > { %s1307_s5 = scalar_lea.hbm %s1386_s3, %s742_s11  ;;  %p897_p2 = scmp.ne.s32.totalorder %s1309_s10, %s896_s8 }
 0x152   : > { %p1408_p1 = scmp.ne.s32.totalorder %s1395_s26, 0  ;;  %s1026_s28 = smov [#allocation9]  }
 0x153   : > { %s900_s29 = sshll.u32 %s1026_s28, 4  ;;  %s901_s29 = int_to_ptr.vmem [resolvable:$false] %s900_s29 }
 0x154   : > { %p898_p5 = pnand %p897_p2, %p1408_p1  ;;  %s902_s24 = scalar_lea.vmem %s901_s29, 192 }
 0x155   : > { %p903_p10 = scmp.lt.s32.totalorder %s1309_s10, %s901_s29  ;;  %p904_p12 = scmp.lt.s32.totalorder %s902_s24, %s896_s8 }
 0x156   : > { %p899_p3 = pneg %p898_p5 }
 0x157   : > { %p905_p7 = por %p904_p12, %p903_p10 }
 0x159   : > { %p906_p8 = pnand %p905_p7, %p899_p3 }
 0x15b   : > { %909 = shalt.err (!%p906_p8)
}
 0x15c   : > { %s910_s12 = scalar_lea.hbm %s1307_s5, 96  ;;  %s914_s25 = scalar_lea.hbm %s1386_s3, 192 }
 0x15d   : > { %p911_p9 = scmp.ne.s32.totalorder %s1307_s5, %s910_s12  ;;  %p915_p0 = scmp.lt.u32.totalorder %s1307_s5, %s1386_s3 }
 0x15e   : > { %p916_p11 = scmp.lt.u32.totalorder %s914_s25, %s910_s12  ;;  %p918_p2 = scmp.lt.u32.totalorder %s910_s12, %s1307_s5 }
 0x15f   : > { %p912_p13 = pnand %p911_p9, %p1408_p1 }
 0x160   : > { %p917_p6 = por %p916_p11, %p915_p0 }
 0x161   : > { %p913_p4 = pneg %p912_p13 }
 0x162   : > { %p919_p5 = por %p918_p2, %p917_p6 }
 0x164   : > { %p920_p3 = pnand %p919_p5, %p913_p4 }
 0x166   : > { %923 = shalt.err (!%p920_p3)
}
 0x167   : > { %s1027_s21 = smov 32   ;;  %s1028_s8 = smov 2  }
 0x168   : > { %753 = dma.vmem_to_hbm [thread:$0]  (%p1408_p1), %s1309_s10, 96, %s1307_s5, %s538_s23, %s1027_s21, %s1027_s21, %s1028_s8  }
 0x169   : > { %s736_s28 = sshll.u32 %s1010_s18, 4  ;;  %s573_s29 = sshll.u32 %s1242_s22, 4  ;;  %s574_s29 = int_to_ptr.vmem [resolvable:$true] %s573_s29 }
 0x16a   : > { %s1340_s13 = scalar_lea.hbm %s1387_s4, %s736_s28  ;;  %s543_s9 = scalar_lea.sflag [#allocation11], %s1229_s30 }
 0x16b   : > { %s924_s25 = scalar_lea.vmem %s574_s29, 16  ;;  %s1029_s11 = smov [#allocation10]  }
 0x16c   : > { %p925_p10 = scmp.ne.s32.totalorder %s574_s29, %s924_s25  ;;  %s928_s7 = sshll.u32 %s1029_s11, 4  ;;  %s929_s7 = int_to_ptr.vmem [resolvable:$false] %s928_s7 }
 0x16d   : > { %s930_s0 = scalar_lea.vmem %s929_s7, 32  ;;  %p931_p8 = scmp.lt.s32.totalorder %s574_s29, %s929_s7 }
 0x16e   : > { %p926_p12 = pnand %p925_p10, %p1408_p1  ;;  %p932_p9 = scmp.lt.s32.totalorder %s930_s0, %s924_s25 }
 0x170   : > { %p927_p7 = pneg %p926_p12  ;;  %p933_p13 = por %p932_p9, %p931_p8 }
 0x172   : > { %p934_p4 = pnand %p933_p13, %p927_p7 }
 0x174   : > { %937 = shalt.err (!%p934_p4)
}
 0x175   : > { %s938_s18 = scalar_lea.hbm %s1340_s13, 16  ;;  %s942_s10 = scalar_lea.hbm %s1387_s4, 32 }
 0x176   : > { %p939_p0 = scmp.ne.s32.totalorder %s1340_s13, %s938_s18  ;;  %p943_p2 = scmp.lt.u32.totalorder %s1340_s13, %s1387_s4 }
 0x177   : > { %p944_p5 = scmp.lt.u32.totalorder %s942_s10, %s938_s18  ;;  %p946_p10 = scmp.lt.u32.totalorder %s938_s18, %s1340_s13 }
 0x178   : > { %p940_p11 = pnand %p939_p0, %p1408_p1 }
 0x179   : > { %p945_p3 = por %p944_p5, %p943_p2 }
 0x17a   : > { %p941_p6 = pneg %p940_p11 }
 0x17b   : > { %p947_p12 = por %p946_p10, %p945_p3 }
 0x17d   : > { %p948_p7 = pnand %p947_p12, %p941_p6 }
 0x17f   : > { %951 = shalt.err (!%p948_p7)
}
 0x180   : > { %754 = dma.vmem_to_hbm [thread:$0]  (%p1408_p1), %s574_s29, 16, %s1340_s13, %s543_s9  }
 0x181 PF: > { %s585_s0 = sand.u32 1, %s998_s15   ;;  %p1409_p8 = scmp.ne.s32.totalorder %s1396_s27, 0 }
 0x182   : > { %p1410_p9 = scmp.ge.s32.totalorder %s1018_s20, 2  ;;  %s586_s21 = scalar_lea.sflag [#allocation4], %s585_s0 }
 0x184   : > { %p769_p13 = pnand %p1410_p9, %p1409_p8 }
 0x186   : > { %989 = dma.done.wait (!%p769_p13), %s586_s21, 96  }
 0x187   : > { %991 = vsyncadd (!%p769_p13), %s586_s21, 4294967200  ;;  %s595_s8 = scalar_lea.sflag [#allocation11], %s585_s0 }
 0x188   : > { %993 = dma.done.wait (!%p769_p13), %s595_s8, 16  }
 0x189   : > { %995 = vsyncadd (!%p769_p13), %s595_s8, 4294967280  ;;  %s26_s20 = sadd.s32 1, %s1018_s20   ;;  %s1411_s15 = smov %s1002_s16 }
 0x18a   : > { %p23_p4 = scmp.ge.s32.totalorder %s26_s20, 4   ;;  %s1412_s16 = smov %s1006_s17 }
 0x18b   : > { %s1413_s17 = smov %s1184_s14  ;;  %s1414_s18 = smov %s1014_s19 }
 0x18c   : > { %s1415_s19 = smov %s1417_s6  ;;  %25 = sbr.rel (!%p23_p4) target bundleno = 12 (0xc), region = 135 }
 0x193   :  { %599 = vsyncpa [#allocation3], 1 }
 0x194   :  { %601 = vsyncpa [#allocation3 + $0x1], 1 }
 0x195   :  { %602 = vsyncpa [#allocation4], 1 }
 0x196   :  { %604 = vsyncpa [#allocation4 + $0x1], 1 }
 0x197   :  { %605 = vsyncpa [#allocation11], 1 }
 0x198   :  { %607 = vsyncpa [#allocation11 + $0x1], 1 }
 0x199   :  { %608 = vsyncpa [#allocation5], 1 }
 0x19a   :  { %610 = vsyncpa [#allocation5 + $0x1], 1 }
 0x19b   :  { %611 = vsyncpa [#allocation7], 1 }

</bundles_post_ra>
